<compile_context>
chip_gen: v7x
topology: tpu7x:2x2x1
jax: 0.10.0
libtpu: 0.0.40
codegen_flags: <defaults>
</compile_context>

<pallas_src>
from functools import partial

import jax
import jax.numpy as jnp
from jax import lax
from jax.experimental import pallas as pl
from jax.experimental.pallas import tpu as pltpu

EPS = 1e-5  # torch.nn.InstanceNorm3d default eps


def _banded_weights(w, H, W, Lp):
    """Bake the 9 in-plane taps of a 3x3x3 conv into one banded (Lp, Lp) matrix
    per depth offset (PyTorch cross-correlation convention).

    B[kd][src, dst] = w[kd, oh+1, ow+1] with dst = h*W + x and
    src = (h+oh)*W + (x+ow); out-of-range (h,w) source positions and all padded
    lanes (>= H*W) stay exactly zero, so no h/w boundary masks are needed in
    the kernel and pad lanes can never leak into valid outputs.
    """
    L = H * W
    w = w.reshape(3, 3, 3).astype(jnp.float32)
    dst = jnp.arange(L)
    h = dst // W
    x = dst % W
    mats = []
    for kd in range(3):
        B = jnp.zeros((Lp, Lp), jnp.float32)
        for oh in (-1, 0, 1):
            for ow in (-1, 0, 1):
                hs, xs = h + oh, x + ow
                valid = (hs >= 0) & (hs < H) & (xs >= 0) & (xs < W)
                src = jnp.where(valid, hs * W + xs, 0)
                vals = jnp.where(valid, w[kd, oh + 1, ow + 1], 0.0)
                B = B.at[src, dst].add(vals)  # adds exact 0 at [0, dst] if invalid
        mats.append(B)
    return jnp.stack(mats)  # (3, Lp, Lp)


def _conv3d_mxu(x, B_ref, D):
    """3x3x3 'same' conv on a lane-dense (D, Lp) slab.

    In-plane taps ride the MXU via the banded matrices; the depth halo is two
    sublane rolls with only the single wrapped row zeroed.
    """
    d_idx = lax.broadcasted_iota(jnp.int32, (D, 1), 0)

    # centre depth tap
    acc = jnp.dot(x, B_ref[1], preferred_element_type=jnp.float32)

    # in[d-1] tap (kd = 0): roll down by one, row 0 is out of range
    x_dn = jnp.where(d_idx >= 1, pltpu.roll(x, shift=1, axis=0), 0.0)
    acc = acc + jnp.dot(x_dn, B_ref[0], preferred_element_type=jnp.float32)

    # in[d+1] tap (kd = 2): roll up by one, row D-1 is out of range
    x_up = jnp.where(d_idx < D - 1, pltpu.roll(x, shift=D - 1, axis=0), 0.0)
    acc = acc + jnp.dot(x_up, B_ref[2], preferred_element_type=jnp.float32)
    return acc


def _rev_sub_kernel(b2_ref, B1_ref, B2_ref, x_ref, o_ref, *, L, n_valid):
    """Fused conv1 -> InstanceNorm3d (no affine) -> ReLU -> conv2 (+bias)."""
    _, D, Lp = x_ref.shape
    x = x_ref[0]                                     # (D, Lp) f32, lane-dense

    # Conv1.  Its bias is omitted on purpose: a constant bias is exactly
    # cancelled by InstanceNorm's mean subtraction and leaves the variance
    # unchanged (saves a full-volume VPU pass).  Pad lanes of y are exactly 0
    # because the corresponding banded-matrix columns are zero.
    y = _conv3d_mxu(x, B1_ref, D)

    # InstanceNorm, two-pass (mean, then centered variance) for numerical
    # fidelity to the PyTorch semantics; same reduction count as one-pass.
    inv_m = 1.0 / n_valid
    mean = jnp.sum(y) * inv_m
    diff = y - mean
    if Lp != L:  # static: exclude pad lanes from the variance / activation
        lane = lax.broadcasted_iota(jnp.int32, (1, Lp), 1)
        diff = jnp.where(lane < L, diff, 0.0)
    var = jnp.sum(diff * diff) * inv_m               # biased variance
    h = jnp.maximum(diff * lax.rsqrt(var + EPS), 0.0)  # normalize + ReLU

    # Conv2 (+ bias).  The intermediate `h` never leaves VMEM/vregs.
    o_ref[0] = _conv3d_mxu(h, B2_ref, D) + b2_ref[0]


def rev_sub_forward(x, w1, b1, w2, b2):
    """x: (N, 1, D, H, W) float32; weights: (1,1,3,3,3); biases: (1,)."""
    N, C, D, H, W = x.shape
    assert C == 1, "RevSub is built with in_channels=out_channels=1"
    L = H * W
    Lp = ((L + 127) // 128) * 128        # keep the minor axis lane-dense (v5e)

    if Lp > 2048:
        # TODO(synk): for large H*W the (Lp, Lp) banded weights no longer fit
        # VMEM; fall back to the roll-based tap formulation (8 lane rolls per
        # conv, depth-weighted sum hoisted before the roll).
        raise NotImplementedError("H*W too large for the MXU banded-matmul path")

    # Banded in-plane weight matrices, one per depth offset, per conv.
    B1 = _banded_weights(w1, H, W, Lp)   # (3, Lp, Lp)
    B2 = _banded_weights(w2, H, W, Lp)
    del b1  # mathematically a no-op under InstanceNorm (see kernel comment)

    # Lane-dense view (N, D, H*W); pad the minor axis only if needed.
    x2 = x.reshape(N, D, L).astype(jnp.float32)
    if Lp != L:
        x2 = jnp.pad(x2, ((0, 0), (0, 0), (0, Lp - L)))

    out = pl.pallas_call(
        partial(_rev_sub_kernel, L=L, n_valid=float(D * L)),
        out_shape=jax.ShapeDtypeStruct((N, D, Lp), jnp.float32),
        grid=(N,),
        in_specs=[
            pl.BlockSpec(memory_space=pltpu.MemorySpace.SMEM),        # b2 (1,)
            pl.BlockSpec((3, Lp, Lp), lambda n: (0, 0, 0)),           # B1 (const)
            pl.BlockSpec((3, Lp, Lp), lambda n: (0, 0, 0)),           # B2 (const)
            pl.BlockSpec((1, D, Lp), lambda n: (n, 0, 0)),            # input volume
        ],
        out_specs=pl.BlockSpec((1, D, Lp), lambda n: (n, 0, 0)),
        compiler_params=pltpu.CompilerParams(
            dimension_semantics=("parallel",),    # v7x: one sample per TensorCore
            vmem_limit_bytes=32 * 1024 * 1024,    # explicit budget (safe on v5e..v7x)
        ),
    )(b2.astype(jnp.float32), B1, B2, x2)

    return out[:, :, :L].reshape(N, 1, D, H, W)


def _reference_forward(x, w1, b1, w2, b2):
    """Pure-JAX reference matching the PyTorch module semantics."""
    dn = lax.conv_dimension_numbers(x.shape, w1.shape, ("NCDHW", "OIDHW", "NCDHW"))
    y = lax.conv_general_dilated(x, w1, (1, 1, 1), [(1, 1)] * 3,
                                 dimension_numbers=dn) + b1.reshape(1, 1, 1, 1, 1)
    mean = jnp.mean(y, axis=(2, 3, 4), keepdims=True)
    var = jnp.mean((y - mean) ** 2, axis=(2, 3, 4), keepdims=True)
    y = (y - mean) / jnp.sqrt(var + EPS)
    y = jnp.maximum(y, 0.0)
    y = lax.conv_general_dilated(y, w2, (1, 1, 1), [(1, 1)] * 3,
                                 dimension_numbers=dn) + b2.reshape(1, 1, 1, 1, 1)
    return y


if __name__ == "__main__":
    key = jax.random.PRNGKey(0)
    kx, kw1, kb1, kw2, kb2 = jax.random.split(key, 5)

    # Small shapes consistent with Conv3d/InstanceNorm3d on a 3-D volume.
    # H*W = 256 keeps the kernel's minor axis lane-dense without padding.
    N, C, D, H, W = 2, 1, 8, 16, 16
    x = jax.random.normal(kx, (N, C, D, H, W), dtype=jnp.float32)

    # Deterministic parameter init (synthetic, roughly Kaiming-scaled).
    fan_in = 1 * 3 * 3 * 3
    scale = 1.0 / jnp.sqrt(jnp.float32(fan_in))
    w1 = jax.random.uniform(kw1, (1, 1, 3, 3, 3), jnp.float32, -scale, scale)
    b1 = jax.random.uniform(kb1, (1,), jnp.float32, -scale, scale)
    w2 = jax.random.uniform(kw2, (1, 1, 3, 3, 3), jnp.float32, -scale, scale)
    b2 = jax.random.uniform(kb2, (1,), jnp.float32, -scale, scale)

    out = jax.block_until_ready(rev_sub_forward(x, w1, b1, w2, b2))

    ref = jax.block_until_ready(_reference_forward(x, w1, b1, w2, b2))
    assert out.shape == (N, C, D, H, W)
    assert jnp.allclose(out, ref, atol=1e-4, rtol=1e-4), "mismatch vs reference"

    print("KERNEL_OK")
</pallas_src>

<mosaic_0001>
module attributes {stable_mosaic.version = 11 : i64} {
  func.func @_rev_sub_kernel(%arg0: i32, %arg1: memref<1xf32, #tpu.memory_space<smem>>, %arg2: memref<3x256x256xf32, #tpu.memory_space<vmem>>, %arg3: memref<3x256x256xf32, #tpu.memory_space<vmem>>, %arg4: memref<1x8x256xf32, #tpu.memory_space<vmem>>, %arg5: memref<1x8x256xf32, #tpu.memory_space<vmem>>) attributes {dimension_semantics = [#tpu.dimension_semantics<parallel>], iteration_bounds = array<i64: 2>, scalar_prefetch = 0 : i64, scratch_operands = 0 : i64, tpu.core_type = #tpu.core_type<tc>, window_params = [{transform_indices = @transform_0, window_bounds = array<i64: 1>}, {pipeline_mode = #tpu.pipeline_mode<synchronous>, transform_indices = @transform_1, window_bounds = array<i64: 3, 256, 256>}, {pipeline_mode = #tpu.pipeline_mode<synchronous>, transform_indices = @transform_2, window_bounds = array<i64: 3, 256, 256>}, {transform_indices = @transform_3, window_bounds = array<i64: 1, 8, 256>}, {transform_indices = @transform_4, window_bounds = array<i64: 1, 8, 256>}]} {
    %c0 = arith.constant 0 : index
    %c0_0 = arith.constant 0 : index
    %c0_1 = arith.constant 0 : index
    %0 = vector.load %arg4[%c0, %c0_0, %c0_1] : memref<1x8x256xf32, #tpu.memory_space<vmem>>, vector<1x8x256xf32>
    %1 = vector.shape_cast %0 : vector<1x8x256xf32> to vector<8x256xf32>
    %2 = tpu.iota {dimensions = array<i32: 0>} : vector<8x1xi32>
    %c1 = arith.constant 1 : index
    %c0_2 = arith.constant 0 : index
    %c0_3 = arith.constant 0 : index
    %3 = vector.load %arg2[%c1, %c0_2, %c0_3] : memref<3x256x256xf32, #tpu.memory_space<vmem>>, vector<1x256x256xf32>
    %4 = vector.shape_cast %3 : vector<1x256x256xf32> to vector<256x256xf32>
    %cst = arith.constant dense<0.000000e+00> : vector<8x256xf32>
    %5 = tpu.matmul %1, %4, %cst {dimension_numbers = #tpu.dot_dimension_numbers<[1], [0], [0], [1], [0, 0, 1, 1], [], []>} : vector<8x256xf32>, vector<256x256xf32>, vector<8x256xf32> -> vector<8x256xf32>
    %c1_i32 = arith.constant 1 : i32
    %6 = vector.broadcast %c1_i32 : i32 to vector<8x1xi32>
    %7 = arith.cmpi sge, %2, %6 : vector<8x1xi32>
    %c1_i32_4 = arith.constant 1 : i32
    %8 = tpu.dynamic_rotate %1 by %c1_i32_4 dim 0 : vector<8x256xf32>, i32 -> vector<8x256xf32>
    %cst_5 = arith.constant 0.000000e+00 : f32
    %9 = vector.shape_cast %7 : vector<8x1xi1> to vector<8x1xi1>
    %10 = vector.broadcast %9 : vector<8x1xi1> to vector<8x256xi1>
    %11 = vector.broadcast %cst_5 : f32 to vector<8x256xf32>
    %12 = arith.select %10, %8, %11 : vector<8x256xi1>, vector<8x256xf32>
    %c0_6 = arith.constant 0 : index
    %c0_7 = arith.constant 0 : index
    %c0_8 = arith.constant 0 : index
    %13 = vector.load %arg2[%c0_6, %c0_7, %c0_8] : memref<3x256x256xf32, #tpu.memory_space<vmem>>, vector<1x256x256xf32>
    %14 = vector.shape_cast %13 : vector<1x256x256xf32> to vector<256x256xf32>
    %cst_9 = arith.constant dense<0.000000e+00> : vector<8x256xf32>
    %15 = tpu.matmul %12, %14, %cst_9 {dimension_numbers = #tpu.dot_dimension_numbers<[1], [0], [0], [1], [0, 0, 1, 1], [], []>} : vector<8x256xf32>, vector<256x256xf32>, vector<8x256xf32> -> vector<8x256xf32>
    %16 = arith.addf %5, %15 : vector<8x256xf32>
    %c7_i32 = arith.constant 7 : i32
    %17 = vector.broadcast %c7_i32 : i32 to vector<8x1xi32>
    %18 = arith.cmpi slt, %2, %17 : vector<8x1xi32>
    %c7_i32_10 = arith.constant 7 : i32
    %19 = tpu.dynamic_rotate %1 by %c7_i32_10 dim 0 : vector<8x256xf32>, i32 -> vector<8x256xf32>
    %cst_11 = arith.constant 0.000000e+00 : f32
    %20 = vector.shape_cast %18 : vector<8x1xi1> to vector<8x1xi1>
    %21 = vector.broadcast %20 : vector<8x1xi1> to vector<8x256xi1>
    %22 = vector.broadcast %cst_11 : f32 to vector<8x256xf32>
    %23 = arith.select %21, %19, %22 : vector<8x256xi1>, vector<8x256xf32>
    %c2 = arith.constant 2 : index
    %c0_12 = arith.constant 0 : index
    %c0_13 = arith.constant 0 : index
    %24 = vector.load %arg2[%c2, %c0_12, %c0_13] : memref<3x256x256xf32, #tpu.memory_space<vmem>>, vector<1x256x256xf32>
    %25 = vector.shape_cast %24 : vector<1x256x256xf32> to vector<256x256xf32>
    %cst_14 = arith.constant dense<0.000000e+00> : vector<8x256xf32>
    %26 = tpu.matmul %23, %25, %cst_14 {dimension_numbers = #tpu.dot_dimension_numbers<[1], [0], [0], [1], [0, 0, 1, 1], [], []>} : vector<8x256xf32>, vector<256x256xf32>, vector<8x256xf32> -> vector<8x256xf32>
    %27 = arith.addf %16, %26 : vector<8x256xf32>
    %28 = vector.shape_cast %27 : vector<8x256xf32> to vector<1x8x256xf32>
    %cst_15 = arith.constant dense<0.000000e+00> : vector<1xf32>
    %29 = vector.multi_reduction <add>, %28, %cst_15 [1, 2] : vector<1x8x256xf32> to vector<1xf32>
    %30 = vector.shape_cast %29 : vector<1xf32> to vector<1x1x1xf32>
    %31 = vector.extract %30[0, 0, 0] : f32 from vector<1x1x1xf32>
    %cst_16 = arith.constant 4.8828125E-4 : f32
    %32 = arith.mulf %31, %cst_16 : f32
    %33 = vector.broadcast %32 : f32 to vector<8x256xf32>
    %34 = arith.subf %27, %33 : vector<8x256xf32>
    %35 = arith.mulf %34, %34 : vector<8x256xf32>
    %36 = vector.shape_cast %35 : vector<8x256xf32> to vector<1x8x256xf32>
    %cst_17 = arith.constant dense<0.000000e+00> : vector<1xf32>
    %37 = vector.multi_reduction <add>, %36, %cst_17 [1, 2] : vector<1x8x256xf32> to vector<1xf32>
    %38 = vector.shape_cast %37 : vector<1xf32> to vector<1x1x1xf32>
    %39 = vector.extract %38[0, 0, 0] : f32 from vector<1x1x1xf32>
    %cst_18 = arith.constant 4.8828125E-4 : f32
    %40 = arith.mulf %39, %cst_18 : f32
    %cst_19 = arith.constant 9.99999974E-6 : f32
    %41 = arith.addf %40, %cst_19 : f32
    %42 = math.rsqrt %41 : f32
    %43 = vector.broadcast %42 : f32 to vector<8x256xf32>
    %44 = arith.mulf %34, %43 : vector<8x256xf32>
    %cst_20 = arith.constant 0.000000e+00 : f32
    %45 = vector.broadcast %cst_20 : f32 to vector<8x256xf32>
    %46 = arith.maximumf %44, %45 : vector<8x256xf32>
    %47 = tpu.iota {dimensions = array<i32: 0>} : vector<8x1xi32>
    %c1_21 = arith.constant 1 : index
    %c0_22 = arith.constant 0 : index
    %c0_23 = arith.constant 0 : index
    %48 = vector.load %arg3[%c1_21, %c0_22, %c0_23] : memref<3x256x256xf32, #tpu.memory_space<vmem>>, vector<1x256x256xf32>
    %49 = vector.shape_cast %48 : vector<1x256x256xf32> to vector<256x256xf32>
    %cst_24 = arith.constant dense<0.000000e+00> : vector<8x256xf32>
    %50 = tpu.matmul %46, %49, %cst_24 {dimension_numbers = #tpu.dot_dimension_numbers<[1], [0], [0], [1], [0, 0, 1, 1], [], []>} : vector<8x256xf32>, vector<256x256xf32>, vector<8x256xf32> -> vector<8x256xf32>
    %c1_i32_25 = arith.constant 1 : i32
    %51 = vector.broadcast %c1_i32_25 : i32 to vector<8x1xi32>
    %52 = arith.cmpi sge, %47, %51 : vector<8x1xi32>
    %c1_i32_26 = arith.constant 1 : i32
    %53 = tpu.dynamic_rotate %46 by %c1_i32_26 dim 0 : vector<8x256xf32>, i32 -> vector<8x256xf32>
    %cst_27 = arith.constant 0.000000e+00 : f32
    %54 = vector.shape_cast %52 : vector<8x1xi1> to vector<8x1xi1>
    %55 = vector.broadcast %54 : vector<8x1xi1> to vector<8x256xi1>
    %56 = vector.broadcast %cst_27 : f32 to vector<8x256xf32>
    %57 = arith.select %55, %53, %56 : vector<8x256xi1>, vector<8x256xf32>
    %c0_28 = arith.constant 0 : index
    %c0_29 = arith.constant 0 : index
    %c0_30 = arith.constant 0 : index
    %58 = vector.load %arg3[%c0_28, %c0_29, %c0_30] : memref<3x256x256xf32, #tpu.memory_space<vmem>>, vector<1x256x256xf32>
    %59 = vector.shape_cast %58 : vector<1x256x256xf32> to vector<256x256xf32>
    %cst_31 = arith.constant dense<0.000000e+00> : vector<8x256xf32>
    %60 = tpu.matmul %57, %59, %cst_31 {dimension_numbers = #tpu.dot_dimension_numbers<[1], [0], [0], [1], [0, 0, 1, 1], [], []>} : vector<8x256xf32>, vector<256x256xf32>, vector<8x256xf32> -> vector<8x256xf32>
    %61 = arith.addf %50, %60 : vector<8x256xf32>
    %c7_i32_32 = arith.constant 7 : i32
    %62 = vector.broadcast %c7_i32_32 : i32 to vector<8x1xi32>
    %63 = arith.cmpi slt, %47, %62 : vector<8x1xi32>
    %c7_i32_33 = arith.constant 7 : i32
    %64 = tpu.dynamic_rotate %46 by %c7_i32_33 dim 0 : vector<8x256xf32>, i32 -> vector<8x256xf32>
    %cst_34 = arith.constant 0.000000e+00 : f32
    %65 = vector.shape_cast %63 : vector<8x1xi1> to vector<8x1xi1>
    %66 = vector.broadcast %65 : vector<8x1xi1> to vector<8x256xi1>
    %67 = vector.broadcast %cst_34 : f32 to vector<8x256xf32>
    %68 = arith.select %66, %64, %67 : vector<8x256xi1>, vector<8x256xf32>
    %c2_35 = arith.constant 2 : index
    %c0_36 = arith.constant 0 : index
    %c0_37 = arith.constant 0 : index
    %69 = vector.load %arg3[%c2_35, %c0_36, %c0_37] : memref<3x256x256xf32, #tpu.memory_space<vmem>>, vector<1x256x256xf32>
    %70 = vector.shape_cast %69 : vector<1x256x256xf32> to vector<256x256xf32>
    %cst_38 = arith.constant dense<0.000000e+00> : vector<8x256xf32>
    %71 = tpu.matmul %68, %70, %cst_38 {dimension_numbers = #tpu.dot_dimension_numbers<[1], [0], [0], [1], [0, 0, 1, 1], [], []>} : vector<8x256xf32>, vector<256x256xf32>, vector<8x256xf32> -> vector<8x256xf32>
    %72 = arith.addf %61, %71 : vector<8x256xf32>
    %c0_39 = arith.constant 0 : index
    %73 = memref.load %arg1[%c0_39] : memref<1xf32, #tpu.memory_space<smem>>
    %74 = vector.broadcast %73 : f32 to vector<8x256xf32>
    %75 = arith.addf %72, %74 : vector<8x256xf32>
    %c0_40 = arith.constant 0 : index
    %c0_41 = arith.constant 0 : index
    %c0_42 = arith.constant 0 : index
    %76 = vector.load %arg5[%c0_40, %c0_41, %c0_42] : memref<1x8x256xf32, #tpu.memory_space<vmem>>, vector<1x8x256xf32>
    %77 = vector.shape_cast %76 : vector<1x8x256xf32> to vector<8x256xf32>
    %78 = vector.shape_cast %75 : vector<8x256xf32> to vector<1x8x256xf32>
    tpu.vector_store %arg5[%c0_40, %c0_41, %c0_42], %78 {strides = array<i32>} : memref<1x8x256xf32, #tpu.memory_space<vmem>>, vector<1x8x256xf32>,
    return
  }
  func.func @transform_0(%arg0: i32) -> i32 {
    %c0_i32 = arith.constant 0 : i32
    %c0_i32_0 = arith.constant 0 : i32
    return %c0_i32 : i32
  }
  func.func @transform_1(%arg0: i32) -> (i32, i32, i32) {
    %c0_i32 = arith.constant 0 : i32
    %c0_i32_0 = arith.constant 0 : i32
    %c0_i32_1 = arith.constant 0 : i32
    %c0_i32_2 = arith.constant 0 : i32
    return %c0_i32, %c0_i32_0, %c0_i32_1 : i32, i32, i32
  }
  func.func @transform_2(%arg0: i32) -> (i32, i32, i32) {
    %c0_i32 = arith.constant 0 : i32
    %c0_i32_0 = arith.constant 0 : i32
    %c0_i32_1 = arith.constant 0 : i32
    %c0_i32_2 = arith.constant 0 : i32
    return %c0_i32, %c0_i32_0, %c0_i32_1 : i32, i32, i32
  }
  func.func @transform_3(%arg0: i32) -> (i32, i32, i32) {
    %c0_i32 = arith.constant 0 : i32
    %c0_i32_0 = arith.constant 0 : i32
    %c0_i32_1 = arith.constant 0 : i32
    return %arg0, %c0_i32, %c0_i32_0 : i32, i32, i32
  }
  func.func @transform_4(%arg0: i32) -> (i32, i32, i32) {
    %c0_i32 = arith.constant 0 : i32
    %c0_i32_0 = arith.constant 0 : i32
    %c0_i32_1 = arith.constant 0 : i32
    return %arg0, %c0_i32, %c0_i32_0 : i32, i32, i32
  }
}

</mosaic_0001>

<bundles_post_ra>
// kernel: tpu_custom_call.1
= control target key start
LH: loop header
LB: loop body
LE: loop exit
PB: predicated region body
PF: predicated region fallthrough
CT: control target
= control target key end

     0   :  { %s2217_s0 = inlined_call_operand.<no memory space> [shape: f32[1], index: 0, kind: input, shape index: {}]   ;;  %s2218_s1 = inlined_call_operand.hbm [shape: f32[3,256,256], index: 1, kind: input, shape index: {}]   ;;  %s2219_s2 = inlined_call_operand.hbm [shape: f32[3,256,256], index: 2, kind: input, shape index: {}]   ;;  %s2220_s3 = inlined_call_operand.hbm [shape: f32[2,8,256], index: 3, kind: input, shape index: {}]   ;;  %s2221_s4 = inlined_call_operand.hbm [shape: f32[2,8,256], index: 4, kind: output, shape index: {}]  }
   0x1   :  { %9 = sst [smem:[#allocation2]] %s2217_s0 }
   0x2   :  { %10 = vsyncpa [#allocation4], 0 }
   0x3   :  { %11 = vsyncpa [#allocation7], 0 }
   0x4   :  { %12 = vsyncpa [#allocation5], 0 }
   0x5   :  { %14 = vsyncpa [#allocation5 + $0x1], 0  ;;  %s1925_s17 = smov 0   ;;  %s1927_s18 = smov 0  }
   0x6   :  { %s1929_s19 = smov 0   ;;  %s1931_s20 = smov 0  }
   0x7 LB: > { %s1946_s0 = sadd.s32 4294967295, %s1889_s20   ;;  %s1232_s21 = sadd.s32 4294967294, %s1889_s20   ;;  %s1889_s20 = sphi %s1931_s20, %s2243_s20   ;;  %s1885_s19 = sphi %s1929_s19, %s2242_s19   ;;  %s1881_s18 = sphi %s1927_s18, %s2241_s18   ;;  %s1877_s17 = sphi %s1925_s17, %s2240_s17  }
   0x8   : > { %p103_p0 = scmp.ne.s32.totalorder %s1881_s18, %s1877_s17  ;;  %p2222_p1 = scmp.eq.s32.totalorder %s1946_s0, 0 }
   0x9   : > { %p133_p3 = scmp.eq.s32.totalorder %s1232_s21, 1  ;;  %p1233_p5 = scmp.ge.s32.totalorder %s1889_s20, 1 }
   0xa   : > { %p1955_p4 = por %p2222_p1, %p103_p0  ;;  %p140_p7 = scmp.lt.s32.totalorder %s1889_s20, 3 }
   0xb   : > { %p1960_p6 = por %p133_p3, %p103_p0  ;;  %s1891_s25 = smov [#allocation3]  }
   0xc   : > { %s2225_s22 = scalar_select %p1955_p4, 1, 0 }
   0xd   : > { %s2226_s23 = scalar_select %p1960_p6, 1, 0 }
   0xe   : > { %p1965_p8 = pnand %p1233_p5, %p140_p7  ;;  %s155_s26 = sshll.u32 %s1891_s25, 4  ;;  %s1969_s26 = int_to_ptr.vmem [resolvable:$true] %s155_s26 }
   0xf   : > { %s1892_s28 = smov [#allocation6]   ;;  %s1729_s6 = scalar_lea.hbm %s2218_s1, 24576 }
  0x10   : > { %p1670_p9 = pneg %p1965_p8  ;;  %s168_s29 = sshll.u32 %s1892_s28, 4  ;;  %s1980_s29 = int_to_ptr.vmem [resolvable:$true] %s168_s29 }
  0x11   : > { %p1730_p12 = scmp.ne.s32.totalorder %s2218_s1, %s1729_s6  ;;  %p1736_p5 = scmp.lt.u32.totalorder %s1729_s6, %s2218_s1 }
  0x12   : > { %p1976_p11 = pnand %p1670_p9, %p2222_p1 }
  0x14   : > { %p1731_p13 = pneg %p1976_p11 }
  0x16   : > { %p1732_p0 = pnand %p1731_p13, %p1730_p12 }
  0x18   : > { %p1733_p3 = pneg %p1732_p0 }
  0x1a   : > { %p1738_p7 = pnand %p1736_p5, %p1733_p3 }
  0x1c   : > { %1741 = shalt.err (!%p1738_p7)
}
  0x1d   : > { %s1742_s11 = scalar_lea.vmem %s1969_s26, 24576  ;;  %p1750_p2 = scmp.lt.s32.totalorder %s1969_s26, %s1969_s26 }
  0x1e   : > { %p1743_p9 = scmp.ne.s32.totalorder %s1969_s26, %s1742_s11  ;;  %p1751_p12 = scmp.lt.s32.totalorder %s1742_s11, %s1742_s11 }
  0x20   : > { %p1745_p10 = pnand %p1743_p9, %p1731_p13  ;;  %p1752_p0 = por %p1751_p12, %p1750_p2 }
  0x22   : > { %p1746_p1 = pneg %p1745_p10 }
  0x24   : > { %p1753_p6 = pnand %p1752_p0, %p1746_p1 }
  0x26   : > { %1756 = shalt.err (!%p1753_p6)
}
  0x27   : > { %s1893_s12 = smov 256   ;;  %s1894_s13 = smov 16  }
  0x28   : > { %1673 = dma.hbm_to_vmem [thread:$0]  (!%p1976_p11), %s2218_s1, 24576, %s1969_s26, [#allocation4], %s1893_s12, %s1893_s12, %s1894_s13  }
  0x29   : > { %s1757_s25 = scalar_lea.hbm %s2219_s2, 24576 }
  0x2a   : > { %p1758_p2 = scmp.ne.s32.totalorder %s2219_s2, %s1757_s25  ;;  %p1764_p10 = scmp.lt.u32.totalorder %s1757_s25, %s2219_s2 }
  0x2c   : > { %p1760_p1 = pnand %p1758_p2, %p1731_p13 }
  0x2e   : > { %p1761_p6 = pneg %p1760_p1 }
  0x30   : > { %p1766_p3 = pnand %p1764_p10, %p1761_p6 }
  0x32   : > { %1769 = shalt.err (!%p1766_p3)
}
  0x33   : > { %s1770_s26 = scalar_lea.vmem %s1980_s29, 24576  ;;  %p1778_p12 = scmp.lt.s32.totalorder %s1980_s29, %s1980_s29 }
  0x34   : > { %p1771_p5 = scmp.ne.s32.totalorder %s1980_s29, %s1770_s26  ;;  %p1779_p0 = scmp.lt.s32.totalorder %s1770_s26, %s1770_s26 }
  0x36   : > { %p1773_p7 = pnand %p1771_p5, %p1731_p13  ;;  %p1780_p2 = por %p1779_p0, %p1778_p12 }
  0x38   : > { %p1774_p9 = pneg %p1773_p7 }
  0x3a   : > { %p1781_p1 = pnand %p1780_p2, %p1774_p9 }
  0x3c   : > { %1784 = shalt.err (!%p1781_p1)
}
  0x3d   : > { %1676 = dma.hbm_to_vmem [thread:$0]  (!%p1976_p11), %s2219_s2, 24576, %s1980_s29, [#allocation7], %s1893_s12, %s1893_s12, %s1894_s13  }
  0x3e   : > { %s2035_s9 = sadd.s32 1, %s1889_s20   ;;  %s90_s27 = sadd.s32 1, %s1885_s19 }
  0x3f   : > { %s87_s10 = ssub.s32 %s1889_s20, %s2035_s9  ;;  %p97_p13 = scmp.ne.s32.totalorder %s1885_s19, %s1881_s18 }
  0x40   : > { %p88_p6 = scmp.eq.s32.totalorder %s87_s10, 0  ;;  %p98_p10 = scmp.eq.s32.totalorder %s1889_s20, 0 }
  0x41   : > { %p2229_p3 = scmp.eq.s32.totalorder %s1946_s0, 1  ;;  %p1687_p7 = scmp.lt.s32.totalorder %s1889_s20, 2 }
  0x42   : > { %s2051_s14 = scalar_select %p88_p6, %s1885_s19, %s90_s27  }
  0x43   : > { %p2045_p5 = por %p2229_p3, %p97_p13  ;;  %p99_p9 = por %p98_p10, %p97_p13 }
  0x44   : > { %s182_s15 = sand.u32 1, %s1889_s20   ;;  %s184_s16 = sand.u32 1, %s1885_s19  }
  0x45   : > { %s2230_s11 = scalar_select %p2045_p5, 1, 0 }
  0x46   : > { %s1237_s29 = sshll.u32 %s184_s16, 4  ;;  %s1258_s12 = sshll.u32 %s1889_s20, 8 }
  0x47   : > { %s2059_s25 = scalar_lea.hbm %s2220_s3, %s1258_s12  ;;  %s186_s28 = scalar_lea.vmem [#allocation8], %s1237_s29 }
  0x48   : > { %s194_s30 = sshll.u32 %s186_s28, 4  ;;  %p2061_p11 = pnand %p1687_p7, %p99_p9  ;;  %s2065_s30 = int_to_ptr.vmem [resolvable:$true] %s194_s30 }
  0x49   : > { %s183_s6 = scalar_lea.sflag [#allocation4], %s182_s15  ;;  %s1785_s26 = scalar_lea.hbm %s2059_s25, 256 }
  0x4a   : > { %p1786_p12 = scmp.ne.s32.totalorder %s2059_s25, %s1785_s26  ;;  %p1787_p0 = pneg %p2061_p11 }
  0x4b   : > { %s1790_s27 = scalar_lea.hbm %s2220_s3, 512  ;;  %p1791_p13 = scmp.lt.u32.totalorder %s2059_s25, %s2220_s3 }
  0x4c   : > { %p1788_p2 = pnand %p1787_p0, %p1786_p12  ;;  %p1792_p6 = scmp.lt.u32.totalorder %s1790_s27, %s1785_s26 }
  0x4d   : > { %p1794_p3 = scmp.lt.u32.totalorder %s1785_s26, %s2059_s25 }
  0x4e   : > { %p1789_p1 = pneg %p1788_p2  ;;  %p1793_p10 = por %p1792_p6, %p1791_p13 }
  0x50   : > { %p1795_p7 = por %p1794_p3, %p1793_p10 }
  0x52   : > { %p1796_p9 = pnand %p1795_p7, %p1789_p1 }
  0x54   : > { %1799 = shalt.err (!%p1796_p9)
}
  0x55   : > { %s1800_s15 = scalar_lea.vmem %s2065_s30, 256  ;;  %s1895_s29 = smov [#allocation8]  }
  0x56   : > { %p1801_p12 = scmp.ne.s32.totalorder %s2065_s30, %s1800_s15  ;;  %s1805_s12 = sshll.u32 %s1895_s29, 4  ;;  %s1806_s12 = int_to_ptr.vmem [resolvable:$false] %s1805_s12 }
  0x57   : > { %s1807_s13 = scalar_lea.vmem %s1806_s12, 512  ;;  %p1808_p4 = scmp.lt.s32.totalorder %s2065_s30, %s1806_s12 }
  0x58   : > { %p1803_p2 = pnand %p1801_p12, %p1787_p0  ;;  %p1809_p13 = scmp.lt.s32.totalorder %s1807_s13, %s1800_s15 }
  0x5a   : > { %p1804_p5 = pneg %p1803_p2  ;;  %p1810_p6 = por %p1809_p13, %p1808_p4 }
  0x5c   : > { %p1811_p10 = pnand %p1810_p6, %p1804_p5 }
  0x5e   : > { %1814 = shalt.err (!%p1811_p10)
}
  0x5f   : > { %1680 = dma.hbm_to_vmem [thread:$0]  (!%p2061_p11), %s2059_s25, 256, %s2065_s30, %s183_s6  }
  0x60   : > { %203 = sbr.rel (%p1965_p8) target bundleno = 1370 (0x55a), region = 36  ;;  %p2232_p0 = scmp.eq.s32.totalorder (!%p1965_p8), %s1946_s0, 0 }
  0x67   : > { %1860 = dma.done.wait (%p2232_p0), [#allocation4], 24576   ;;  %p2233_p1 = pmov %p2232_p0 }
  0x68   : > { %p2234_p3 = pmov %p2232_p0 }
  0x69   : > { %1862 = vsyncadd (%p2233_p1), [#allocation4], 4294942720 }
  0x6a   : > { %1864 = dma.done.wait (%p2234_p3), [#allocation7], 24576   ;;  %p2235_p4 = pmov %p2232_p0 }
  0x6b   : > { %s213_s21 = sand.u32 1, %s1946_s0   ;;  %s215_s25 = sand.u32 1, %s1881_s18  }
  0x6c   : > { %1866 = vsyncadd (%p2235_p4), [#allocation7], 4294942720  ;;  %s2106_s24 = sshll.u32 %s215_s25, 4  ;;  %s214_s28 = scalar_lea.sflag [#allocation4], %s213_s21 }
  0x6d   : > { %s217_s30 = scalar_lea.vmem [#allocation8], %s2106_s24  ;;  %p2236_p8 = scmp.ne.s32.totalorder %s2225_s22, 0 }
  0x6f   : > { %1868 = dma.done.wait (%p2236_p8), %s214_s28, 256  }
  0x70   : > { %1870 = vsyncadd (%p2236_p8), %s214_s28, 4294967040  ;;  %v319_v0 = vld [vmem:[#allocation3 + $0x8] sm:$0xff]  ;;  %v321_v1 = vld [vmem:[#allocation3 + $0x18] sm:$0xff]  ;;  %v244_v29 = vlaneseq  ;;  %s1122_s27 = sld [smem:[#allocation2]]  ;;  %s1259_s10 = sshll.u32 %s1946_s0, 8 }
  0x71   : > { %v318_v2 = vld [vmem:[#allocation3] sm:$0xff]  ;;  %v1260_v3 = vpack.c.bf16 %v321_v1, %v319_v0  ;;  %v320_v4 = vld [vmem:[#allocation3 + $0x10] sm:$0xff]  ;;  %v323_v5 = vld [vmem:[#allocation3 + $0x28] sm:$0xff]  ;;  %s241_s16 = scalar_lea.vmem [#allocation9], %s2106_s24  ;;  %s2172_s13 = scalar_lea.hbm %s2221_s4, %s1259_s10 }
  0x72   : > { %v325_v6 = vld [vmem:[#allocation3 + $0x38] sm:$0xff]  ;;  %v1262_v7 = vpack.c.bf16 %v320_v4, %v318_v2  ;;  %v322_v9 = vld [vmem:[#allocation3 + $0x20] sm:$0xff]  ;;  %v324_v10 = vld [vmem:[#allocation3 + $0x30] sm:$0xff]  ;;  %v2113_v36 = vshrl.u32 %v244_v29, 7  ;;  %s1143_s15 = sshll.u32 %s241_s16, 4  ;;  %s1129_s0 = scalar_lea.sflag [#allocation5], %s215_s25  ;;  %s2174_s15 = int_to_ptr.vmem [resolvable:$true] %s1143_s15 }
  0x73   : > { %v1264_v8 = vpack.c.bf16 %v325_v6, %v323_v5  ;;  %v327_v11 = vld [vmem:[#allocation3 + $0x48] sm:$0xff]  ;;  %1261 = vmatprep.subr.bf16.mxu0 %v1260_v3  ;;  %v329_v12 = vld [vmem:[#allocation3 + $0x58] sm:$0xff]  ;;  %v1266_v13 = vpack.c.bf16 %v324_v10, %v322_v9  ;;  %v326_v15 = vld [vmem:[#allocation3 + $0x40] sm:$0xff]  ;;  %s1815_s21 = scalar_lea.vmem %s2174_s15, 256  ;;  %p2237_p11 = scmp.ne.s32.totalorder %s2230_s11, 0 }
  0x74   : > { %1263 = vmatpush1.bf16.msra.mxu0 %v1262_v7  ;;  %v1268_v14 = vpack.c.bf16 %v329_v12, %v327_v11  ;;  %v328_v16 = vld [vmem:[#allocation3 + $0x50] sm:$0xff]  ;;  %v331_v17 = vld [vmem:[#allocation3 + $0x68] sm:$0xff]  ;;  %v333_v18 = vld [vmem:[#allocation3 + $0x78] sm:$0xff]  ;;  %vm311_vm0 = vcmp.ge.s32.totalorder %v2113_v36, 1  ;;  %vm524_vm1 = vcmp.lt.s32.totalorder %v2113_v36, 7  ;;  %p1816_p5 = scmp.ne.s32.totalorder %s2174_s15, %s1815_s21  ;;  %s1896_s24 = smov [#allocation9]  }
  0x75   : > { %1265 = vmatprep.subr.bf16.mxu0 %v1264_v8  ;;  %v1270_v19 = vpack.c.bf16 %v328_v16, %v326_v15  ;;  %v1272_v20 = vpack.c.bf16 %v333_v18, %v331_v17  ;;  %v330_v21 = vld [vmem:[#allocation3 + $0x60] sm:$0xff]  ;;  %v332_v22 = vld [vmem:[#allocation3 + $0x70] sm:$0xff]  ;;  %v335_v23 = vld [vmem:[#allocation3 + $0x88] sm:$0xff]  ;;  %s1819_s28 = sshll.u32 %s1896_s24, 4  ;;  %s1820_s28 = int_to_ptr.vmem [resolvable:$false] %s1819_s28 }
  0x76   : > { %v337_v24 = vld [vmem:[#allocation3 + $0x98] sm:$0xff]  ;;  %v1274_v25 = vpack.c.bf16 %v332_v22, %v330_v21  ;;  %v334_v27 = vld [vmem:[#allocation3 + $0x80] sm:$0xff]  ;;  %v336_v28 = vld [vmem:[#allocation3 + $0x90] sm:$0xff]  ;;  %p1817_p7 = pnand %p1816_p5, %p2237_p11  ;;  %p1822_p12 = scmp.lt.s32.totalorder %s2174_s15, %s1820_s28 }
  0x77   : > { %v1276_v26 = vpack.c.bf16 %v337_v24, %v335_v23  ;;  %v339_v30 = vld [vmem:[#allocation3 + $0xa8] sm:$0xff]  ;;  %v341_v31 = vld [vmem:[#allocation3 + $0xb8] sm:$0xff]  ;;  %v1278_v32 = vpack.c.bf16 %v336_v28, %v334_v27  ;;  %v338_v34 = vld [vmem:[#allocation3 + $0xa0] sm:$0xff] }
  0x78   : > { %1267 = vmatpush1.bf16.msra.mxu0 %v1266_v13  ;;  %v1280_v33 = vpack.c.bf16 %v341_v31, %v339_v30  ;;  %v340_v35 = vld [vmem:[#allocation3 + $0xb0] sm:$0xff]  ;;  %v343_v37 = vld [vmem:[#allocation3 + $0xc8] sm:$0xff]  ;;  %v345_v38 = vld [vmem:[#allocation3 + $0xd8] sm:$0xff]  ;;  %p1818_p9 = pneg %p1817_p7 }
  0x79   : > { %1269 = vmatprep.subr.bf16.mxu0 %v1268_v14  ;;  %v1282_v39 = vpack.c.bf16 %v340_v35, %v338_v34  ;;  %v1284_v40 = vpack.c.bf16 %v345_v38, %v343_v37  ;;  %v342_v41 = vld [vmem:[#allocation3 + $0xc0] sm:$0xff]  ;;  %v344_v42 = vld [vmem:[#allocation3 + $0xd0] sm:$0xff]  ;;  %v2117_v43 = vld [vmem:[%s217_s30 + $0x8] sm:$0xff] }
  0x7a   : > { %v347_v44 = vld [vmem:[#allocation3 + $0xe8] sm:$0xff]  ;;  %v349_v45 = vld [vmem:[#allocation3 + $0xf8] sm:$0xff]  ;;  %v313_v46 = vrot.slane %v2117_v43, 7  ;;  %v1286_v47 = vpack.c.bf16 %v344_v42, %v342_v41  ;;  %v346_v49 = vld [vmem:[#allocation3 + $0xe0] sm:$0xff] }
  0x7b   : > { %v1288_v48 = vpack.c.bf16 %v349_v45, %v347_v44  ;;  %v348_v50 = vld [vmem:[#allocation3 + $0xf0] sm:$0xff]  ;;  %v351_v51 = vld [vmem:[#allocation3 + $0x108] sm:$0xff]  ;;  %v353_v52 = vld [vmem:[#allocation3 + $0x118] sm:$0xff] }
  0x7c   : > { %1271 = vmatpush1.bf16.msra.mxu0 %v1270_v19  ;;  %1245 = vmatprep.mubr.msk.f32.mxu0 %vm311_vm0, %v313_v46  ;;  %v1290_v53 = vpack.c.bf16 %v348_v50, %v346_v49  ;;  %v1292_v54 = vpack.c.bf16 %v353_v52, %v351_v51  ;;  %v350_v55 = vld [vmem:[#allocation3 + $0x100] sm:$0xff]  ;;  %v352_v56 = vld [vmem:[#allocation3 + $0x110] sm:$0xff]  ;;  %v355_v57 = vld [vmem:[#allocation3 + $0x128] sm:$0xff] }
  0x7d   : > { %1273 = vmatprep.subr.bf16.mxu0 %v1272_v20  ;;  %v357_v58 = vld [vmem:[#allocation3 + $0x138] sm:$0xff]  ;;  %v1294_v59 = vpack.c.bf16 %v352_v56, %v350_v55  ;;  %v354_v61 = vld [vmem:[#allocation3 + $0x120] sm:$0xff]  ;;  %v356_v62 = vld [vmem:[#allocation3 + $0x130] sm:$0xff] }
  0x7e   : > { %v1296_v60 = vpack.c.bf16 %v357_v58, %v355_v57  ;;  %v359_v63 = vld [vmem:[#allocation3 + $0x148] sm:$0xff]  ;;  %v361_v0 = vld [vmem:[#allocation3 + $0x158] sm:$0xff]  ;;  %v1298_v1 = vpack.c.bf16 %v356_v62, %v354_v61  ;;  %v358_v3 = vld [vmem:[#allocation3 + $0x140] sm:$0xff] }
  0x7f   : > { %v1300_v2 = vpack.c.bf16 %v361_v0, %v359_v63  ;;  %v360_v4 = vld [vmem:[#allocation3 + $0x150] sm:$0xff]  ;;  %v363_v5 = vld [vmem:[#allocation3 + $0x168] sm:$0xff]  ;;  %v365_v6 = vld [vmem:[#allocation3 + $0x178] sm:$0xff] }
  0x80   : > { %1275 = vmatpush1.bf16.msra.mxu0 %v1274_v25  ;;  %v1302_v7 = vpack.c.bf16 %v360_v4, %v358_v3  ;;  %v1304_v8 = vpack.c.bf16 %v365_v6, %v363_v5  ;;  %v362_v9 = vld [vmem:[#allocation3 + $0x160] sm:$0xff]  ;;  %v364_v10 = vld [vmem:[#allocation3 + $0x170] sm:$0xff]  ;;  %v367_v11 = vld [vmem:[#allocation3 + $0x188] sm:$0xff] }
  0x81   : > { %1277 = vmatprep.subr.bf16.mxu0 %v1276_v26  ;;  %v369_v12 = vld [vmem:[#allocation3 + $0x198] sm:$0xff]  ;;  %v1306_v13 = vpack.c.bf16 %v364_v10, %v362_v9  ;;  %v366_v15 = vld [vmem:[#allocation3 + $0x180] sm:$0xff]  ;;  %v368_v16 = vld [vmem:[#allocation3 + $0x190] sm:$0xff] }
  0x82   : > { %v1308_v14 = vpack.c.bf16 %v369_v12, %v367_v11  ;;  %v371_v17 = vld [vmem:[#allocation3 + $0x1a8] sm:$0xff]  ;;  %v373_v18 = vld [vmem:[#allocation3 + $0x1b8] sm:$0xff]  ;;  %v1310_v19 = vpack.c.bf16 %v368_v16, %v366_v15  ;;  %v370_v21 = vld [vmem:[#allocation3 + $0x1a0] sm:$0xff] }
  0x83   : > { %v1312_v20 = vpack.c.bf16 %v373_v18, %v371_v17  ;;  %v372_v22 = vld [vmem:[#allocation3 + $0x1b0] sm:$0xff]  ;;  %v375_v23 = vld [vmem:[#allocation3 + $0x1c8] sm:$0xff]  ;;  %v377_v24 = vld [vmem:[#allocation3 + $0x1d8] sm:$0xff] }
  0x84   : > { %1279 = vmatpush1.bf16.msra.mxu0 %v1278_v32  ;;  %v1314_v25 = vpack.c.bf16 %v372_v22, %v370_v21  ;;  %v1316_v26 = vpack.c.bf16 %v377_v24, %v375_v23  ;;  %v374_v27 = vld [vmem:[#allocation3 + $0x1c0] sm:$0xff]  ;;  %v376_v28 = vld [vmem:[#allocation3 + $0x1d0] sm:$0xff]  ;;  %v379_v29 = vld [vmem:[#allocation3 + $0x1e8] sm:$0xff] }
  0x85   : > { %1281 = vmatprep.subr.bf16.mxu0 %v1280_v33  ;;  %v381_v30 = vld [vmem:[#allocation3 + $0x1f8] sm:$0xff]  ;;  %v1318_v31 = vpack.c.bf16 %v376_v28, %v374_v27  ;;  %v378_v33 = vld [vmem:[#allocation3 + $0x1e0] sm:$0xff]  ;;  %v380_v34 = vld [vmem:[#allocation3 + $0x1f0] sm:$0xff] }
  0x86   : > { %v1320_v32 = vpack.c.bf16 %v381_v30, %v379_v29  ;;  %v248_v35 = vld [vmem:[#allocation3 + $0x208] sm:$0xff]  ;;  %v250_v37 = vld [vmem:[#allocation3 + $0x218] sm:$0xff]  ;;  %v1322_v38 = vpack.c.bf16 %v380_v34, %v378_v33  ;;  %v247_v41 = vld [vmem:[#allocation3 + $0x200] sm:$0xff] }
  0x87   : > { %v249_v42 = vld [vmem:[#allocation3 + $0x210] sm:$0xff]  ;;  %v252_v44 = vld [vmem:[#allocation3 + $0x228] sm:$0xff]  ;;  %v254_v45 = vld [vmem:[#allocation3 + $0x238] sm:$0xff] }
  0x88   : > { %1283 = vmatpush1.bf16.msra.mxu0 %v1282_v39  ;;  %v2125_v39 = vld [vmem:[%s217_s30] sm:$0xff]  ;;  %v256_v51 = vld [vmem:[#allocation3 + $0x248] sm:$0xff]  ;;  %v258_v52 = vld [vmem:[#allocation3 + $0x258] sm:$0xff]  ;;  %s1821_s30 = scalar_lea.vmem %s1820_s28, 512 }
  0x89   : > { %1285 = vmatprep.subr.bf16.mxu0 %v1284_v40  ;;  %v1324_v40 = vpack.c.bf16 %v250_v37, %v248_v35  ;;  %v312_v46 = vrot.slane %v2125_v39, 7  ;;  %v251_v49 = vld [vmem:[#allocation3 + $0x220] sm:$0xff]  ;;  %v253_v50 = vld [vmem:[#allocation3 + $0x230] sm:$0xff]  ;;  %v260_v57 = vld [vmem:[#allocation3 + $0x268] sm:$0xff]  ;;  %p1823_p2 = scmp.lt.s32.totalorder %s1821_s30, %s1815_s21 }
  0x8a   : > { %v255_v55 = vld [vmem:[#allocation3 + $0x240] sm:$0xff]  ;;  %v257_v56 = vld [vmem:[#allocation3 + $0x250] sm:$0xff]  ;;  %v262_v58 = vld [vmem:[#allocation3 + $0x278] sm:$0xff] }
  0x8b   : > { %v259_v61 = vld [vmem:[#allocation3 + $0x260] sm:$0xff]  ;;  %v261_v62 = vld [vmem:[#allocation3 + $0x270] sm:$0xff]  ;;  %v264_v63 = vld [vmem:[#allocation3 + $0x288] sm:$0xff]  ;;  %p1824_p13 = por %p1823_p2, %p1822_p12 }
  0x8c   : > { %1287 = vmatpush1.bf16.msra.mxu0 %v1286_v47  ;;  %v1326_v47 = vpack.c.bf16 %v249_v42, %v247_v41  ;;  %v266_v0 = vld [vmem:[#allocation3 + $0x298] sm:$0xff]  ;;  %v263_v3 = vld [vmem:[#allocation3 + $0x280] sm:$0xff]  ;;  %v265_v4 = vld [vmem:[#allocation3 + $0x290] sm:$0xff] }
  0x8d   : > { %1289 = vmatprep.subr.bf16.mxu0 %v1288_v48  ;;  %v1328_v48 = vpack.c.bf16 %v254_v45, %v252_v44  ;;  %v268_v5 = vld [vmem:[#allocation3 + $0x2a8] sm:$0xff]  ;;  %v270_v6 = vld [vmem:[#allocation3 + $0x2b8] sm:$0xff]  ;;  %v267_v9 = vld [vmem:[#allocation3 + $0x2a0] sm:$0xff]  ;;  %p1825_p6 = pnand %p1824_p13, %p1818_p9 }
  0x8e   : > { %v269_v10 = vld [vmem:[#allocation3 + $0x2b0] sm:$0xff]  ;;  %v272_v11 = vld [vmem:[#allocation3 + $0x2c8] sm:$0xff]  ;;  %v274_v12 = vld [vmem:[#allocation3 + $0x2d8] sm:$0xff] }
  0x8f   : > { %v271_v15 = vld [vmem:[#allocation3 + $0x2c0] sm:$0xff]  ;;  %v273_v16 = vld [vmem:[#allocation3 + $0x2d0] sm:$0xff]  ;;  %v276_v17 = vld [vmem:[#allocation3 + $0x2e8] sm:$0xff] }
  0x90   : > { %1291 = vmatpush1.bf16.msra.mxu0 %v1290_v53  ;;  %v1330_v53 = vpack.c.bf16 %v253_v50, %v251_v49  ;;  %v278_v18 = vld [vmem:[#allocation3 + $0x2f8] sm:$0xff]  ;;  %v275_v21 = vld [vmem:[#allocation3 + $0x2e0] sm:$0xff]  ;;  %v277_v22 = vld [vmem:[#allocation3 + $0x2f0] sm:$0xff] }
  0x91   : > { %1293 = vmatprep.subr.bf16.mxu0 %v1292_v54  ;;  %v1332_v54 = vpack.c.bf16 %v258_v52, %v256_v51  ;;  %v280_v23 = vld [vmem:[#allocation3 + $0x308] sm:$0xff]  ;;  %v282_v24 = vld [vmem:[#allocation3 + $0x318] sm:$0xff]  ;;  %v279_v27 = vld [vmem:[#allocation3 + $0x300] sm:$0xff] }
  0x92   : > { %v281_v28 = vld [vmem:[#allocation3 + $0x310] sm:$0xff]  ;;  %v284_v29 = vld [vmem:[#allocation3 + $0x328] sm:$0xff]  ;;  %v286_v30 = vld [vmem:[#allocation3 + $0x338] sm:$0xff] }
  0x93   : > { %v283_v33 = vld [vmem:[#allocation3 + $0x320] sm:$0xff]  ;;  %v285_v34 = vld [vmem:[#allocation3 + $0x330] sm:$0xff]  ;;  %v288_v35 = vld [vmem:[#allocation3 + $0x348] sm:$0xff] }
  0x94   : > { %1295 = vmatpush1.bf16.msra.mxu0 %v1294_v59  ;;  %v1334_v59 = vpack.c.bf16 %v257_v56, %v255_v55  ;;  %v290_v37 = vld [vmem:[#allocation3 + $0x358] sm:$0xff]  ;;  %v287_v41 = vld [vmem:[#allocation3 + $0x340] sm:$0xff]  ;;  %v289_v42 = vld [vmem:[#allocation3 + $0x350] sm:$0xff] }
  0x95   : > { %1297 = vmatprep.subr.bf16.mxu0 %v1296_v60  ;;  %v1336_v60 = vpack.c.bf16 %v262_v58, %v260_v57  ;;  %v292_v44 = vld [vmem:[#allocation3 + $0x368] sm:$0xff]  ;;  %v294_v45 = vld [vmem:[#allocation3 + $0x378] sm:$0xff]  ;;  %v293_v49 = vld [vmem:[#allocation3 + $0x370] sm:$0xff] }
  0x96   : > { %v296_v50 = vld [vmem:[#allocation3 + $0x388] sm:$0xff]  ;;  %v298_v51 = vld [vmem:[#allocation3 + $0x398] sm:$0xff]  ;;  %v297_v55 = vld [vmem:[#allocation3 + $0x390] sm:$0xff] }
  0x97   : > { %v300_v56 = vld [vmem:[#allocation3 + $0x3a8] sm:$0xff]  ;;  %v302_v57 = vld [vmem:[#allocation3 + $0x3b8] sm:$0xff] }
  0x98   : > { %1299 = vmatpush1.bf16.msra.mxu0 %v1298_v1  ;;  %v1338_v1 = vpack.c.bf16 %v261_v62, %v259_v61  ;;  %v301_v61 = vld [vmem:[#allocation3 + $0x3b0] sm:$0xff]  ;;  %v304_v62 = vld [vmem:[#allocation3 + $0x3c8] sm:$0xff] }
  0x99   : > { %1301 = vmatprep.subr.bf16.mxu0 %v1300_v2  ;;  %v1340_v2 = vpack.c.bf16 %v266_v0, %v264_v63  ;;  %v306_v63 = vld [vmem:[#allocation3 + $0x3d8] sm:$0xff] }
  0x9c   : > { %1303 = vmatpush1.bf16.msra.mxu0 %v1302_v7  ;;  %v1342_v7 = vpack.c.bf16 %v265_v4, %v263_v3  ;;  %v305_v3 = vld [vmem:[#allocation3 + $0x3d0] sm:$0xff]  ;;  %v308_v4 = vld [vmem:[#allocation3 + $0x3e8] sm:$0xff] }
  0x9d   : > { %1305 = vmatprep.subr.bf16.mxu0 %v1304_v8  ;;  %v1344_v8 = vpack.c.bf16 %v270_v6, %v268_v5  ;;  %v310_v5 = vld [vmem:[#allocation3 + $0x3f8] sm:$0xff] }
  0xa0   : > { %1307 = vmatpush1.bf16.msra.mxu0 %v1306_v13  ;;  %v1346_v13 = vpack.c.bf16 %v269_v10, %v267_v9  ;;  %v309_v9 = vld [vmem:[#allocation3 + $0x3f0] sm:$0xff]  ;;  %v533_v10 = vld [vmem:[#allocation3 + $0x408] sm:$0xff] }
  0xa1   : > { %1309 = vmatprep.subr.bf16.mxu0 %v1308_v14  ;;  %v1348_v14 = vpack.c.bf16 %v274_v12, %v272_v11  ;;  %v535_v11 = vld [vmem:[#allocation3 + $0x418] sm:$0xff] }
  0xa4   : > { %1311 = vmatpush1.bf16.msra.mxu0 %v1310_v19  ;;  %v1350_v19 = vpack.c.bf16 %v273_v16, %v271_v15  ;;  %v534_v15 = vld [vmem:[#allocation3 + $0x410] sm:$0xff]  ;;  %v537_v16 = vld [vmem:[#allocation3 + $0x428] sm:$0xff] }
  0xa5   : > { %1313 = vmatprep.subr.bf16.mxu0 %v1312_v20  ;;  %v1352_v20 = vpack.c.bf16 %v278_v18, %v276_v17  ;;  %v539_v17 = vld [vmem:[#allocation3 + $0x438] sm:$0xff]  ;;  %v526_v18 = vrot.slane %v2117_v43, 1 }
  0xa8   : > { %1315 = vmatpush1.bf16.msra.mxu0 %v1314_v25  ;;  %v1354_v25 = vpack.c.bf16 %v277_v22, %v275_v21  ;;  %v536_v21 = vld [vmem:[#allocation3 + $0x420] sm:$0xff]  ;;  %v538_v22 = vld [vmem:[#allocation3 + $0x430] sm:$0xff] }
  0xa9   : > { %1317 = vmatprep.subr.bf16.mxu0 %v1316_v26  ;;  %v1356_v26 = vpack.c.bf16 %v282_v24, %v280_v23  ;;  %v541_v23 = vld [vmem:[#allocation3 + $0x448] sm:$0xff]  ;;  %v543_v24 = vld [vmem:[#allocation3 + $0x458] sm:$0xff] }
  0xac   : > { %1319 = vmatpush1.bf16.msra.mxu0 %v1318_v31  ;;  %v1358_v31 = vpack.c.bf16 %v281_v28, %v279_v27  ;;  %v542_v27 = vld [vmem:[#allocation3 + $0x450] sm:$0xff]  ;;  %v545_v28 = vld [vmem:[#allocation3 + $0x468] sm:$0xff] }
  0xad   : > { %1321 = vmatprep.subr.bf16.mxu0 %v1320_v32  ;;  %v1360_v32 = vpack.c.bf16 %v286_v30, %v284_v29  ;;  %v547_v29 = vld [vmem:[#allocation3 + $0x478] sm:$0xff] }
  0xb0   : > { %1323 = vmatpush1.bf16.msra.mxu0 %v1322_v38  ;;  %v1362_v38 = vpack.c.bf16 %v285_v34, %v283_v33  ;;  %v546_v33 = vld [vmem:[#allocation3 + $0x470] sm:$0xff]  ;;  %v549_v34 = vld [vmem:[#allocation3 + $0x488] sm:$0xff] }
  0xb1   : > { %1325 = vmatprep.subr.bf16.mxu0 %v1324_v40  ;;  %v1364_v40 = vpack.c.bf16 %v290_v37, %v288_v35  ;;  %v551_v35 = vld [vmem:[#allocation3 + $0x498] sm:$0xff] }
  0xb3   : > { %1246 = vmatmul.mubr.msk.f32.vlgmr.msra.gmra.mrb[0].mxu0 %vm311_vm0, %v312_v46  ;;  %v1366_v46 = vpack.c.bf16 %v289_v42, %v287_v41  ;;  %v550_v41 = vld [vmem:[#allocation3 + $0x490] sm:$0xff]  ;;  %v553_v42 = vld [vmem:[#allocation3 + $0x4a8] sm:$0xff] }
  0xb4   : > { %1327 = vmatpush1.bf16.msra.mxu0 %v1326_v47  ;;  %517 = vmatprep.mubr.f32.mxu0 %v2117_v43  ;;  %v1368_v47 = vpack.c.bf16 %v294_v45, %v292_v44  ;;  %v540_v43 = vld [vmem:[#allocation3 + $0x440] sm:$0xff]  ;;  %v555_v44 = vld [vmem:[#allocation3 + $0x4b8] sm:$0xff] }
  0xb5   : > { %1329 = vmatprep.subr.bf16.mxu0 %v1328_v48  ;;  %v291_v48 = vld [vmem:[#allocation3 + $0x360] sm:$0xff]  ;;  %v1398_v30 = vpack.c.bf16 %v542_v27, %v540_v43  ;;  %v585_v43 = vld [vmem:[#allocation3 + $0x5a8] sm:$0xff]  ;;  %v587_v27 = vld [vmem:[#allocation3 + $0x5b8] sm:$0xff] }
  0xb6   : > { %v1370_v52 = vpack.c.bf16 %v293_v49, %v291_v48  ;;  %v554_v48 = vld [vmem:[#allocation3 + $0x4b0] sm:$0xff]  ;;  %v557_v49 = vld [vmem:[#allocation3 + $0x4c8] sm:$0xff] }
  0xb8   : > { %1331 = vmatpush1.bf16.msra.mxu0 %v1330_v53  ;;  %v1372_v53 = vpack.c.bf16 %v298_v51, %v296_v50  ;;  %v559_v50 = vld [vmem:[#allocation3 + $0x4d8] sm:$0xff] }
  0xb9   : > { %1333 = vmatprep.subr.bf16.mxu0 %v1332_v54  ;;  %v295_v54 = vld [vmem:[#allocation3 + $0x380] sm:$0xff] }
  0xba   : > { %v1374_v58 = vpack.c.bf16 %v297_v55, %v295_v54  ;;  %v558_v54 = vld [vmem:[#allocation3 + $0x4d0] sm:$0xff]  ;;  %v561_v55 = vld [vmem:[#allocation3 + $0x4e8] sm:$0xff] }
  0xbc   : > { %1335 = vmatpush1.bf16.msra.mxu0 %v1334_v59  ;;  %v1376_v59 = vpack.c.bf16 %v302_v57, %v300_v56  ;;  %v563_v56 = vld [vmem:[#allocation3 + $0x4f8] sm:$0xff] }
  0xbd   : > { %1337 = vmatprep.subr.bf16.mxu0 %v1336_v60  ;;  %v299_v60 = vld [vmem:[#allocation3 + $0x3a0] sm:$0xff] }
  0xbe   : > { %v1378_v0 = vpack.c.bf16 %v301_v61, %v299_v60  ;;  %v562_v60 = vld [vmem:[#allocation3 + $0x4f0] sm:$0xff]  ;;  %v565_v61 = vld [vmem:[#allocation3 + $0x508] sm:$0xff] }
  0xc0   : > { %1339 = vmatpush1.bf16.msra.mxu0 %v1338_v1  ;;  %v1380_v1 = vpack.c.bf16 %v306_v63, %v304_v62  ;;  %v567_v62 = vld [vmem:[#allocation3 + $0x518] sm:$0xff] }
  0xc1   : > { %1341 = vmatprep.subr.bf16.mxu0 %v1340_v2  ;;  %v303_v2 = vld [vmem:[#allocation3 + $0x3c0] sm:$0xff] }
  0xc2   : > { %v1382_v6 = vpack.c.bf16 %v305_v3, %v303_v2  ;;  %v566_v2 = vld [vmem:[#allocation3 + $0x510] sm:$0xff]  ;;  %v569_v3 = vld [vmem:[#allocation3 + $0x528] sm:$0xff] }
  0xc4   : > { %1343 = vmatpush1.bf16.msra.mxu0 %v1342_v7  ;;  %v1384_v7 = vpack.c.bf16 %v310_v5, %v308_v4  ;;  %v571_v4 = vld [vmem:[#allocation3 + $0x538] sm:$0xff] }
  0xc5   : > { %1345 = vmatprep.subr.bf16.mxu0 %v1344_v8  ;;  %v307_v8 = vld [vmem:[#allocation3 + $0x3e0] sm:$0xff] }
  0xc6   : > { %v1386_v12 = vpack.c.bf16 %v309_v9, %v307_v8  ;;  %v570_v8 = vld [vmem:[#allocation3 + $0x530] sm:$0xff]  ;;  %v573_v9 = vld [vmem:[#allocation3 + $0x548] sm:$0xff] }
  0xc8   : > { %1347 = vmatpush1.bf16.msra.mxu0 %v1346_v13  ;;  %v1388_v13 = vpack.c.bf16 %v535_v11, %v533_v10  ;;  %v575_v10 = vld [vmem:[#allocation3 + $0x558] sm:$0xff] }
  0xc9   : > { %1349 = vmatprep.subr.bf16.mxu0 %v1348_v14  ;;  %v532_v14 = vld [vmem:[#allocation3 + $0x400] sm:$0xff] }
  0xcc   : > { %1351 = vmatpush1.bf16.msra.mxu0 %v1350_v19  ;;  %v1390_v19 = vpack.c.bf16 %v534_v15, %v532_v14  ;;  %v574_v14 = vld [vmem:[#allocation3 + $0x550] sm:$0xff]  ;;  %v577_v15 = vld [vmem:[#allocation3 + $0x568] sm:$0xff] }
  0xcd   : > { %1353 = vmatprep.subr.bf16.mxu0 %v1352_v20  ;;  %v1392_v20 = vpack.c.bf16 %v539_v17, %v537_v16  ;;  %v579_v16 = vld [vmem:[#allocation3 + $0x578] sm:$0xff] }
  0xd0   : > { %1355 = vmatpush1.bf16.msra.mxu0 %v1354_v25  ;;  %v1394_v25 = vpack.c.bf16 %v538_v22, %v536_v21  ;;  %v581_v21 = vld [vmem:[#allocation3 + $0x588] sm:$0xff]  ;;  %v583_v22 = vld [vmem:[#allocation3 + $0x598] sm:$0xff] }
  0xd1   : > { %1357 = vmatprep.subr.bf16.mxu0 %v1356_v26  ;;  %v1396_v26 = vpack.c.bf16 %v543_v24, %v541_v23  ;;  %v1436_v24 = vpack.c.bf16 %v583_v22, %v581_v21  ;;  %v788_v22 = vld [vmem:[#allocation6 + $0x70] sm:$0xff] }
  0xd4   : > { %1359 = vmatpush1.bf16.msra.mxu0 %v1358_v31  ;;  %v1400_v31 = vpack.c.bf16 %v547_v29, %v545_v28  ;;  %v1440_v29 = vpack.c.bf16 %v587_v27, %v585_v43  ;;  %v790_v43 = vld [vmem:[#allocation6 + $0x80] sm:$0xff]  ;;  %v792_v27 = vld [vmem:[#allocation6 + $0x90] sm:$0xff] }
  0xd5   : > { %1361 = vmatprep.subr.bf16.mxu0 %v1360_v32  ;;  %v544_v32 = vld [vmem:[#allocation3 + $0x460] sm:$0xff] }
  0xd6   : > { %v1402_v37 = vpack.c.bf16 %v546_v33, %v544_v32  ;;  %v589_v32 = vld [vmem:[#allocation3 + $0x5c8] sm:$0xff]  ;;  %v591_v33 = vld [vmem:[#allocation3 + $0x5d8] sm:$0xff] }
  0xd8   : > { %1363 = vmatpush1.bf16.msra.mxu0 %v1362_v38  ;;  %v1404_v38 = vpack.c.bf16 %v551_v35, %v549_v34  ;;  %v1444_v35 = vpack.c.bf16 %v591_v33, %v589_v32  ;;  %v794_v32 = vld [vmem:[#allocation6 + $0xa0] sm:$0xff]  ;;  %v796_v33 = vld [vmem:[#allocation6 + $0xb0] sm:$0xff] }
  0xd9   : > { %1365 = vmatprep.subr.bf16.mxu0 %v1364_v40  ;;  %v548_v40 = vld [vmem:[#allocation3 + $0x480] sm:$0xff] }
  0xda   : > { %v1406_v45 = vpack.c.bf16 %v550_v41, %v548_v40  ;;  %v593_v40 = vld [vmem:[#allocation3 + $0x5e8] sm:$0xff]  ;;  %v595_v41 = vld [vmem:[#allocation3 + $0x5f8] sm:$0xff] }
  0xdc   : > { %1367 = vmatpush1.bf16.msra.mxu0 %v1366_v46  ;;  %v1408_v46 = vpack.c.bf16 %v555_v44, %v553_v42  ;;  %v1448_v44 = vpack.c.bf16 %v595_v41, %v593_v40  ;;  %v798_v40 = vld [vmem:[#allocation6 + $0xc0] sm:$0xff]  ;;  %v800_v41 = vld [vmem:[#allocation6 + $0xd0] sm:$0xff] }
  0xdd   : > { %1369 = vmatprep.subr.bf16.mxu0 %v1368_v47  ;;  %v552_v47 = vld [vmem:[#allocation3 + $0x4a0] sm:$0xff] }
  0xde   : > { %v1410_v51 = vpack.c.bf16 %v554_v48, %v552_v47  ;;  %v525_v48 = vrot.slane %v2125_v39, 1 }
  0xe0   : > { %1371 = vmatpush1.bf16.msra.mxu0 %v1370_v52  ;;  %v1412_v52 = vpack.c.bf16 %v559_v50, %v557_v49 }
  0xe1   : > { %1373 = vmatprep.subr.bf16.mxu0 %v1372_v53  ;;  %v556_v53 = vld [vmem:[#allocation3 + $0x4c0] sm:$0xff] }
  0xe2   : > { %v1414_v57 = vpack.c.bf16 %v558_v54, %v556_v53 }
  0xe4   : > { %1375 = vmatpush1.bf16.msra.mxu0 %v1374_v58  ;;  %v1416_v58 = vpack.c.bf16 %v563_v56, %v561_v55 }
  0xe5   : > { %1377 = vmatprep.subr.bf16.mxu0 %v1376_v59  ;;  %v560_v59 = vld [vmem:[#allocation3 + $0x4e0] sm:$0xff] }
  0xe6   : > { %v1418_v63 = vpack.c.bf16 %v562_v60, %v560_v59 }
  0xe8   : > { %1379 = vmatpush1.bf16.msra.mxu0 %v1378_v0  ;;  %v1420_v0 = vpack.c.bf16 %v567_v62, %v565_v61 }
  0xe9   : > { %1381 = vmatprep.subr.bf16.mxu0 %v1380_v1  ;;  %v564_v1 = vld [vmem:[#allocation3 + $0x500] sm:$0xff] }
  0xea   : > { %v1422_v5 = vpack.c.bf16 %v566_v2, %v564_v1  ;;  %v777_v1 = vld [vmem:[#allocation6 + $0x18] sm:$0xff]  ;;  %v774_v2 = vld [vmem:[#allocation6] sm:$0xff] }
  0xec   : > { %1383 = vmatpush1.bf16.msra.mxu0 %v1382_v6  ;;  %v1424_v6 = vpack.c.bf16 %v571_v4, %v569_v3  ;;  %v776_v4 = vld [vmem:[#allocation6 + $0x10] sm:$0xff] }
  0xed   : > { %1385 = vmatprep.subr.bf16.mxu0 %v1384_v7  ;;  %v568_v7 = vld [vmem:[#allocation3 + $0x520] sm:$0xff] }
  0xee   : > { %v1426_v11 = vpack.c.bf16 %v570_v8, %v568_v7  ;;  %v1454_v7 = vpack.c.bf16 %v776_v4, %v774_v2  ;;  %v814_v2 = vld [vmem:[#allocation6 + $0x140] sm:$0xff]  ;;  %v819_v4 = vld [vmem:[#allocation6 + $0x168] sm:$0xff] }
  0xf0   : > { %1387 = vmatpush1.bf16.msra.mxu0 %v1386_v12  ;;  %v1428_v12 = vpack.c.bf16 %v575_v10, %v573_v9  ;;  %v778_v9 = vld [vmem:[#allocation6 + $0x20] sm:$0xff]  ;;  %v780_v10 = vld [vmem:[#allocation6 + $0x30] sm:$0xff] }
  0xf1   : > { %1389 = vmatprep.subr.bf16.mxu0 %v1388_v13  ;;  %v572_v13 = vld [vmem:[#allocation3 + $0x540] sm:$0xff] }
  0xf2   : > { %v1430_v17 = vpack.c.bf16 %v574_v14, %v572_v13  ;;  %v785_v13 = vld [vmem:[#allocation6 + $0x58] sm:$0xff] }
  0xf3   : > { %518 = vmatmul.mubr.f32.vlgmr.msra.gmra.mrb[0].mxu0 %v2125_v39 }
  0xf4   : > { %1391 = vmatpush1.bf16.msra.mxu0 %v1390_v19  ;;  %1247 = vmatprep.mubr.msk.f32.mxu0 %vm524_vm1, %v526_v18  ;;  %v1432_v18 = vpack.c.bf16 %v579_v16, %v577_v15  ;;  %v576_v19 = vld [vmem:[#allocation3 + $0x560] sm:$0xff]  ;;  %v784_v16 = vld [vmem:[#allocation6 + $0x50] sm:$0xff] }
  0xf5   : > { %1393 = vmatprep.subr.bf16.mxu0 %v1392_v20  ;;  %v578_v20 = vld [vmem:[#allocation3 + $0x570] sm:$0xff]  ;;  %v782_v15 = vld [vmem:[#allocation6 + $0x40] sm:$0xff] }
  0xf6   : > { %v1434_v23 = vpack.c.bf16 %v578_v20, %v576_v19  ;;  %v789_v19 = vld [vmem:[#allocation6 + $0x78] sm:$0xff]  ;;  %v786_v20 = vld [vmem:[#allocation6 + $0x60] sm:$0xff] }
  0xf8   : > { %1395 = vmatpush1.bf16.msra.mxu0 %v1394_v25  ;;  %v580_v25 = vld [vmem:[#allocation3 + $0x580] sm:$0xff] }
  0xf9   : > { %1397 = vmatprep.subr.bf16.mxu0 %v1396_v26  ;;  %v582_v26 = vld [vmem:[#allocation3 + $0x590] sm:$0xff] }
  0xfa   : > { %v1438_v28 = vpack.c.bf16 %v582_v26, %v580_v25  ;;  %v1466_v25 = vpack.c.bf16 %v788_v22, %v786_v20  ;;  %v826_v20 = vld [vmem:[#allocation6 + $0x1a0] sm:$0xff] }
  0xfc   : > { %1399 = vmatpush1.bf16.msra.mxu0 %v1398_v30  ;;  %v584_v30 = vld [vmem:[#allocation3 + $0x5a0] sm:$0xff] }
  0xfd   : > { %1401 = vmatprep.subr.bf16.mxu0 %v1400_v31  ;;  %v586_v31 = vld [vmem:[#allocation3 + $0x5b0] sm:$0xff] }
  0xfe   : > { %v1442_v34 = vpack.c.bf16 %v586_v31, %v584_v30  ;;  %v1470_v30 = vpack.c.bf16 %v792_v27, %v790_v43  ;;  %v832_v43 = vld [vmem:[#allocation6 + $0x1d0] sm:$0xff] }
 0x100   : > { %1403 = vmatpush1.bf16.msra.mxu0 %v1402_v37  ;;  %v588_v37 = vld [vmem:[#allocation3 + $0x5c0] sm:$0xff] }
 0x101   : > { %1405 = vmatprep.subr.bf16.mxu0 %v1404_v38  ;;  %v590_v38 = vld [vmem:[#allocation3 + $0x5d0] sm:$0xff] }
 0x102   : > { %v1446_v42 = vpack.c.bf16 %v590_v38, %v588_v37  ;;  %v1474_v37 = vpack.c.bf16 %v796_v33, %v794_v32  ;;  %v834_v33 = vld [vmem:[#allocation6 + $0x1e0] sm:$0xff] }
 0x104   : > { %1407 = vmatpush1.bf16.msra.mxu0 %v1406_v45  ;;  %v592_v45 = vld [vmem:[#allocation3 + $0x5e0] sm:$0xff] }
 0x105   : > { %1409 = vmatprep.subr.bf16.mxu0 %v1408_v46  ;;  %v594_v46 = vld [vmem:[#allocation3 + $0x5f0] sm:$0xff] }
 0x106   : > { %v1450_v47 = vpack.c.bf16 %v594_v46, %v592_v45  ;;  %v1478_v45 = vpack.c.bf16 %v800_v41, %v798_v40  ;;  %v707_v40 = vld [vmem:[#allocation6 + $0x208] sm:$0xff]  ;;  %v709_v41 = vld [vmem:[#allocation6 + $0x218] sm:$0xff] }
 0x108   : > { %1411 = vmatpush1.bf16.msra.mxu0 %v1410_v51 }
 0x109   : > { %1413 = vmatprep.subr.bf16.mxu0 %v1412_v52 }
 0x10c   : > { %1415 = vmatpush1.bf16.msra.mxu0 %v1414_v57 }
 0x10d   : > { %1417 = vmatprep.subr.bf16.mxu0 %v1416_v58 }
 0x110   : > { %1419 = vmatpush1.bf16.msra.mxu0 %v1418_v63 }
 0x111   : > { %1421 = vmatprep.subr.bf16.mxu0 %v1420_v0  ;;  %v775_v0 = vld [vmem:[#allocation6 + $0x8] sm:$0xff] }
 0x112   : > { %v1452_v3 = vpack.c.bf16 %v777_v1, %v775_v0 }
 0x114   : > { %1423 = vmatpush1.bf16.msra.mxu0 %v1422_v5  ;;  %v779_v5 = vld [vmem:[#allocation6 + $0x28] sm:$0xff]  ;;  %1453 = vmatprep.subr.bf16.mxu1 %v1452_v3  ;;  %v816_v3 = vld [vmem:[#allocation6 + $0x150] sm:$0xff] }
 0x115   : > { %1425 = vmatprep.subr.bf16.mxu0 %v1424_v6  ;;  %v781_v6 = vld [vmem:[#allocation6 + $0x38] sm:$0xff]  ;;  %1455 = vmatpush1.bf16.msra.mxu1 %v1454_v7 }
 0x116   : > { %v1456_v8 = vpack.c.bf16 %v781_v6, %v779_v5  ;;  %v821_v5 = vld [vmem:[#allocation6 + $0x178] sm:$0xff]  ;;  %v1494_v6 = vpack.c.bf16 %v816_v3, %v814_v2  ;;  %v714_v3 = vld [vmem:[#allocation6 + $0x240] sm:$0xff] }
 0x117   : > { %v1496_v7 = vpack.c.bf16 %v821_v5, %v819_v4  ;;  %v716_v4 = vld [vmem:[#allocation6 + $0x250] sm:$0xff]  ;;  %v719_v5 = vld [vmem:[#allocation6 + $0x268] sm:$0xff] }
 0x118   : > { %1427 = vmatpush1.bf16.msra.mxu0 %v1426_v11  ;;  %v1458_v11 = vpack.c.bf16 %v780_v10, %v778_v9  ;;  %1457 = vmatprep.subr.bf16.mxu1 %v1456_v8  ;;  %v818_v8 = vld [vmem:[#allocation6 + $0x160] sm:$0xff]  ;;  %v820_v9 = vld [vmem:[#allocation6 + $0x170] sm:$0xff]  ;;  %v823_v10 = vld [vmem:[#allocation6 + $0x188] sm:$0xff] }
 0x119   : > { %1429 = vmatprep.subr.bf16.mxu0 %v1428_v12  ;;  %v783_v12 = vld [vmem:[#allocation6 + $0x48] sm:$0xff] }
 0x11a   : > { %1459 = vmatpush1.bf16.msra.mxu1 %v1458_v11  ;;  %v1460_v14 = vpack.c.bf16 %v785_v13, %v783_v12  ;;  %v825_v11 = vld [vmem:[#allocation6 + $0x198] sm:$0xff]  ;;  %v1498_v12 = vpack.c.bf16 %v820_v9, %v818_v8  ;;  %v718_v9 = vld [vmem:[#allocation6 + $0x260] sm:$0xff] }
 0x11b   : > { %v1500_v13 = vpack.c.bf16 %v825_v11, %v823_v10  ;;  %v720_v10 = vld [vmem:[#allocation6 + $0x270] sm:$0xff]  ;;  %v723_v11 = vld [vmem:[#allocation6 + $0x288] sm:$0xff] }
 0x11c   : > { %1431 = vmatpush1.bf16.msra.mxu0 %v1430_v17  ;;  %v1462_v17 = vpack.c.bf16 %v784_v16, %v782_v15  ;;  %1461 = vmatprep.subr.bf16.mxu1 %v1460_v14  ;;  %v822_v14 = vld [vmem:[#allocation6 + $0x180] sm:$0xff]  ;;  %v824_v15 = vld [vmem:[#allocation6 + $0x190] sm:$0xff]  ;;  %v827_v16 = vld [vmem:[#allocation6 + $0x1a8] sm:$0xff] }
 0x11d   : > { %1433 = vmatprep.subr.bf16.mxu0 %v1432_v18  ;;  %v787_v18 = vld [vmem:[#allocation6 + $0x68] sm:$0xff] }
 0x11e   : > { %v1464_v21 = vpack.c.bf16 %v789_v19, %v787_v18  ;;  %1463 = vmatpush1.bf16.msra.mxu1 %v1462_v17  ;;  %v829_v17 = vld [vmem:[#allocation6 + $0x1b8] sm:$0xff]  ;;  %v1502_v18 = vpack.c.bf16 %v824_v15, %v822_v14  ;;  %v722_v15 = vld [vmem:[#allocation6 + $0x280] sm:$0xff] }
 0x11f   : > { %v1504_v19 = vpack.c.bf16 %v829_v17, %v827_v16  ;;  %v724_v16 = vld [vmem:[#allocation6 + $0x290] sm:$0xff]  ;;  %v727_v17 = vld [vmem:[#allocation6 + $0x2a8] sm:$0xff] }
 0x120   : > { %1435 = vmatpush1.bf16.msra.mxu0 %v1434_v23  ;;  %v791_v23 = vld [vmem:[#allocation6 + $0x88] sm:$0xff]  ;;  %1465 = vmatprep.subr.bf16.mxu1 %v1464_v21  ;;  %v828_v21 = vld [vmem:[#allocation6 + $0x1b0] sm:$0xff] }
 0x121   : > { %1437 = vmatprep.subr.bf16.mxu0 %v1436_v24  ;;  %v793_v24 = vld [vmem:[#allocation6 + $0x98] sm:$0xff]  ;;  %v1506_v22 = vpack.c.bf16 %v828_v21, %v826_v20  ;;  %v726_v21 = vld [vmem:[#allocation6 + $0x2a0] sm:$0xff] }
 0x122   : > { %v1468_v26 = vpack.c.bf16 %v793_v24, %v791_v23  ;;  %1467 = vmatpush1.bf16.msra.mxu1 %v1466_v25  ;;  %v831_v23 = vld [vmem:[#allocation6 + $0x1c8] sm:$0xff]  ;;  %v833_v24 = vld [vmem:[#allocation6 + $0x1d8] sm:$0xff] }
 0x123   : > { %v1508_v25 = vpack.c.bf16 %v833_v24, %v831_v23  ;;  %v731_v23 = vld [vmem:[#allocation6 + $0x2c8] sm:$0xff]  ;;  %v733_v24 = vld [vmem:[#allocation6 + $0x2d8] sm:$0xff] }
 0x124   : > { %1439 = vmatpush1.bf16.msra.mxu0 %v1438_v28  ;;  %v795_v28 = vld [vmem:[#allocation6 + $0xa8] sm:$0xff]  ;;  %1469 = vmatprep.subr.bf16.mxu1 %v1468_v26  ;;  %v830_v26 = vld [vmem:[#allocation6 + $0x1c0] sm:$0xff] }
 0x125   : > { %1441 = vmatprep.subr.bf16.mxu0 %v1440_v29  ;;  %v797_v29 = vld [vmem:[#allocation6 + $0xb8] sm:$0xff]  ;;  %v1510_v27 = vpack.c.bf16 %v832_v43, %v830_v26  ;;  %v1540_v26 = vpack.c.bf16 %v733_v24, %v731_v23  ;;  %v730_v43 = vld [vmem:[#allocation6 + $0x2c0] sm:$0xff] }
 0x126   : > { %v1472_v31 = vpack.c.bf16 %v797_v29, %v795_v28  ;;  %1471 = vmatpush1.bf16.msra.mxu1 %v1470_v30  ;;  %v835_v30 = vld [vmem:[#allocation6 + $0x1e8] sm:$0xff]  ;;  %v988_v23 = vld [vmem:[#allocation6 + $0x418] sm:$0xff] }
 0x128   : > { %1443 = vmatpush1.bf16.msra.mxu0 %v1442_v34  ;;  %v799_v34 = vld [vmem:[#allocation6 + $0xc8] sm:$0xff]  ;;  %1473 = vmatprep.subr.bf16.mxu1 %v1472_v31  ;;  %v837_v31 = vld [vmem:[#allocation6 + $0x1f8] sm:$0xff] }
 0x129   : > { %1445 = vmatprep.subr.bf16.mxu0 %v1444_v35  ;;  %v801_v35 = vld [vmem:[#allocation6 + $0xd8] sm:$0xff]  ;;  %v1512_v32 = vpack.c.bf16 %v837_v31, %v835_v30 }
 0x12a   : > { %v1476_v38 = vpack.c.bf16 %v801_v35, %v799_v34  ;;  %1475 = vmatpush1.bf16.msra.mxu1 %v1474_v37  ;;  %v836_v34 = vld [vmem:[#allocation6 + $0x1f0] sm:$0xff] }
 0x12b   : > { %v1514_v37 = vpack.c.bf16 %v836_v34, %v834_v33  ;;  %v736_v33 = vld [vmem:[#allocation6 + $0x2f0] sm:$0xff]  ;;  %v739_v34 = vld [vmem:[#allocation6 + $0x308] sm:$0xff] }
 0x12c   : > { %1447 = vmatpush1.bf16.msra.mxu0 %v1446_v42  ;;  %v803_v42 = vld [vmem:[#allocation6 + $0xe8] sm:$0xff]  ;;  %1477 = vmatprep.subr.bf16.mxu1 %v1476_v38 }
 0x12d   : > { %1449 = vmatprep.subr.bf16.mxu0 %v1448_v44  ;;  %v805_v44 = vld [vmem:[#allocation6 + $0xf8] sm:$0xff] }
 0x12e   : > { %v1480_v46 = vpack.c.bf16 %v805_v44, %v803_v42  ;;  %1479 = vmatpush1.bf16.msra.mxu1 %v1478_v45  ;;  %v1516_v42 = vpack.c.bf16 %v709_v41, %v707_v40  ;;  %v738_v40 = vld [vmem:[#allocation6 + $0x300] sm:$0xff]  ;;  %v740_v41 = vld [vmem:[#allocation6 + $0x310] sm:$0xff] }
 0x130   : > { %1451 = vmatpush1.bf16.msra.mxu0 %v1450_v47  ;;  %v802_v47 = vld [vmem:[#allocation6 + $0xe0] sm:$0xff]  ;;  %1481 = vmatprep.subr.bf16.mxu1 %v1480_v46 }
 0x133   : > { %1248 = vmatmul.mubr.msk.f32.vlgmr.msra.gmra.mrb[0].mxu0 %vm524_vm1, %v525_v48  ;;  %v804_v48 = vld [vmem:[#allocation6 + $0xf0] sm:$0xff] }
 0x206   : > { %v662_v49 = vpop.f32.mrb[0].mxu0 }
 0x207   : > { %v664_v50 = vpop.f32.mrb[1].mxu0 }
 0x208   : > { %v669_v51 = vadd.f32 %v664_v50, %v662_v49 }
 0x20a   : > { %670 = vadd.xlane.f32.xlu0 %v669_v51  ;;  %v1482_v51 = vpack.c.bf16 %v804_v48, %v802_v47 }
 0x20c   : > { %1483 = vmatpush1.bf16.msra.mxu1 %v1482_v51 }
 0x297   : > { %v671_v52 = vpop.xlane.xlu0 %670 }
 0x298   : > { %v672_v53 = vrot.slane %v671_v52, 4 }
 0x29a   : > { %v673_v54 = vadd.f32 %v672_v53, %v671_v52  ;;  %v806_v53 = vld [vmem:[#allocation6 + $0x100] sm:$0xff] }
 0x29c   : > { %v674_v55 = vrot.slane %v673_v54, 2 }
 0x29e   : > { %v675_v56 = vadd.f32 %v674_v55, %v673_v54  ;;  %v808_v54 = vld [vmem:[#allocation6 + $0x110] sm:$0xff]  ;;  %v811_v55 = vld [vmem:[#allocation6 + $0x128] sm:$0xff] }
 0x2a0   : > { %v676_v57 = vrot.slane %v675_v56, 1 }
 0x2a2   : > { %v677_v58 = vadd.f32 %v676_v57, %v675_v56  ;;  %v813_v56 = vld [vmem:[#allocation6 + $0x138] sm:$0xff]  ;;  %v1486_v57 = vpack.c.bf16 %v808_v54, %v806_v53  ;;  %v708_v53 = vld [vmem:[#allocation6 + $0x210] sm:$0xff] }
 0x2a4   : > { %1652 = vpush %v677_v58  ;;  %v1488_v58 = vpack.c.bf16 %v813_v56, %v811_v55  ;;  %v711_v56 = vld [vmem:[#allocation6 + $0x228] sm:$0xff] }
 0x2d5   : > { %s1653_s22 = spop %1652 }
 0x2d6   : > { %s679_s5 = smul.f32 0.00048828125, %s1653_s22 }
 0x2d8   : > { %v680_v59 = vstv %s679_s5 }
 0x2d9   : > { %v2139_v39 = vsub.f32 %v662_v49, %v680_v59  ;;  %v2141_v60 = vsub.f32 %v664_v50, %v680_v59  ;;  %v807_v49 = vld [vmem:[#allocation6 + $0x108] sm:$0xff]  ;;  %v809_v50 = vld [vmem:[#allocation6 + $0x118] sm:$0xff]  ;;  %v810_v59 = vld [vmem:[#allocation6 + $0x120] sm:$0xff] }
 0x2da   : > { %v1484_v52 = vpack.c.bf16 %v809_v50, %v807_v49 }
 0x2db   : > { %v683_v61 = vmul.f32 %v2139_v39, %v2139_v39  ;;  %v684_v62 = vmul.f32 %v2141_v60, %v2141_v60 }
 0x2dc   : > { %1485 = vmatprep.subr.bf16.mxu1 %v1484_v52  ;;  %v706_v52 = vld [vmem:[#allocation6 + $0x200] sm:$0xff] }
 0x2dd   : > { %v685_v63 = vadd.f32 %v684_v62, %v683_v61  ;;  %v812_v61 = vld [vmem:[#allocation6 + $0x130] sm:$0xff]  ;;  %v815_v62 = vld [vmem:[#allocation6 + $0x148] sm:$0xff]  ;;  %1487 = vmatpush1.bf16.msra.mxu1 %v1486_v57  ;;  %v713_v57 = vld [vmem:[#allocation6 + $0x238] sm:$0xff] }
 0x2de   : > { %v1490_v0 = vpack.c.bf16 %v812_v61, %v810_v59  ;;  %1489 = vmatprep.subr.bf16.mxu1 %v1488_v58  ;;  %v1518_v61 = vpack.c.bf16 %v708_v53, %v706_v52  ;;  %v746_v53 = vld [vmem:[#allocation6 + $0x340] sm:$0xff] }
 0x2df   : > { %686 = vadd.xlane.f32.xlu0 %v685_v63  ;;  %v817_v63 = vld [vmem:[#allocation6 + $0x158] sm:$0xff] }
 0x2e0   : > { %v1492_v1 = vpack.c.bf16 %v817_v63, %v815_v62  ;;  %v1520_v62 = vpack.c.bf16 %v713_v57, %v711_v56  ;;  %v710_v63 = vld [vmem:[#allocation6 + $0x220] sm:$0xff]  ;;  %v748_v56 = vld [vmem:[#allocation6 + $0x350] sm:$0xff]  ;;  %v751_v57 = vld [vmem:[#allocation6 + $0x368] sm:$0xff] }
 0x2e1   : > { %1491 = vmatpush1.bf16.msra.mxu1 %v1490_v0  ;;  %v712_v0 = vld [vmem:[#allocation6 + $0x230] sm:$0xff] }
 0x2e2   : > { %1493 = vmatprep.subr.bf16.mxu1 %v1492_v1  ;;  %v1522_v1 = vpack.c.bf16 %v712_v0, %v710_v63  ;;  %v752_v63 = vld [vmem:[#allocation6 + $0x370] sm:$0xff]  ;;  %v755_v0 = vld [vmem:[#allocation6 + $0x388] sm:$0xff] }
 0x2e5   : > { %1495 = vmatpush1.bf16.msra.mxu1 %v1494_v6  ;;  %v721_v6 = vld [vmem:[#allocation6 + $0x278] sm:$0xff] }
 0x2e6   : > { %1497 = vmatprep.subr.bf16.mxu1 %v1496_v7  ;;  %v1526_v7 = vpack.c.bf16 %v716_v4, %v714_v3  ;;  %v1528_v8 = vpack.c.bf16 %v721_v6, %v719_v5  ;;  %v756_v3 = vld [vmem:[#allocation6 + $0x390] sm:$0xff]  ;;  %v759_v4 = vld [vmem:[#allocation6 + $0x3a8] sm:$0xff]  ;;  %v761_v5 = vld [vmem:[#allocation6 + $0x3b8] sm:$0xff] }
 0x2e9   : > { %1499 = vmatpush1.bf16.msra.mxu1 %v1498_v12  ;;  %v725_v12 = vld [vmem:[#allocation6 + $0x298] sm:$0xff] }
 0x2ea   : > { %1501 = vmatprep.subr.bf16.mxu1 %v1500_v13  ;;  %v1530_v13 = vpack.c.bf16 %v720_v10, %v718_v9  ;;  %v1532_v14 = vpack.c.bf16 %v725_v12, %v723_v11  ;;  %v760_v9 = vld [vmem:[#allocation6 + $0x3b0] sm:$0xff]  ;;  %v763_v10 = vld [vmem:[#allocation6 + $0x3c8] sm:$0xff]  ;;  %v765_v11 = vld [vmem:[#allocation6 + $0x3d8] sm:$0xff] }
 0x2ed   : > { %1503 = vmatpush1.bf16.msra.mxu1 %v1502_v18  ;;  %v729_v18 = vld [vmem:[#allocation6 + $0x2b8] sm:$0xff] }
 0x2ee   : > { %1505 = vmatprep.subr.bf16.mxu1 %v1504_v19  ;;  %v1534_v19 = vpack.c.bf16 %v724_v16, %v722_v15  ;;  %v1536_v20 = vpack.c.bf16 %v729_v18, %v727_v17  ;;  %v764_v15 = vld [vmem:[#allocation6 + $0x3d0] sm:$0xff]  ;;  %v767_v16 = vld [vmem:[#allocation6 + $0x3e8] sm:$0xff]  ;;  %v769_v17 = vld [vmem:[#allocation6 + $0x3f8] sm:$0xff] }
 0x2f1   : > { %1507 = vmatpush1.bf16.msra.mxu1 %v1506_v22  ;;  %v728_v22 = vld [vmem:[#allocation6 + $0x2b0] sm:$0xff] }
 0x2f2   : > { %1509 = vmatprep.subr.bf16.mxu1 %v1508_v25  ;;  %v1538_v25 = vpack.c.bf16 %v728_v22, %v726_v21  ;;  %v768_v21 = vld [vmem:[#allocation6 + $0x3f0] sm:$0xff]  ;;  %v986_v22 = vld [vmem:[#allocation6 + $0x408] sm:$0xff] }
 0x2f5   : > { %1511 = vmatpush1.bf16.msra.mxu1 %v1510_v27  ;;  %v732_v27 = vld [vmem:[#allocation6 + $0x2d0] sm:$0xff] }
 0x2f6   : > { %1513 = vmatprep.subr.bf16.mxu1 %v1512_v32  ;;  %v1542_v30 = vpack.c.bf16 %v732_v27, %v730_v43  ;;  %v734_v32 = vld [vmem:[#allocation6 + $0x2e0] sm:$0xff]  ;;  %v987_v43 = vld [vmem:[#allocation6 + $0x410] sm:$0xff]  ;;  %v990_v27 = vld [vmem:[#allocation6 + $0x428] sm:$0xff] }
 0x2f9   : > { %1515 = vmatpush1.bf16.msra.mxu1 %v1514_v37  ;;  %v1546_v37 = vpack.c.bf16 %v736_v33, %v734_v32  ;;  %v991_v32 = vld [vmem:[#allocation6 + $0x430] sm:$0xff] }
 0x2fa   : > { %1517 = vmatprep.subr.bf16.mxu1 %v1516_v42  ;;  %v743_v42 = vld [vmem:[#allocation6 + $0x328] sm:$0xff] }
 0x36c   : > { %v687_v28 = vpop.xlane.xlu0 %686 }
 0x36d   : > { %v688_v29 = vrot.slane %v687_v28, 4 }
 0x36f   : > { %v689_v35 = vadd.f32 %v688_v29, %v687_v28  ;;  %v735_v28 = vld [vmem:[#allocation6 + $0x2e8] sm:$0xff]  ;;  %v737_v29 = vld [vmem:[#allocation6 + $0x2f8] sm:$0xff] }
 0x370   : > { %v1544_v31 = vpack.c.bf16 %v737_v29, %v735_v28  ;;  %v992_v28 = vld [vmem:[#allocation6 + $0x438] sm:$0xff] }
 0x371   : > { %v690_v38 = vrot.slane %v689_v35, 2 }
 0x373   : > { %v691_v44 = vadd.f32 %v690_v38, %v689_v35  ;;  %v741_v35 = vld [vmem:[#allocation6 + $0x318] sm:$0xff] }
 0x374   : > { %v1548_v38 = vpack.c.bf16 %v741_v35, %v739_v34  ;;  %v994_v34 = vld [vmem:[#allocation6 + $0x448] sm:$0xff]  ;;  %v996_v35 = vld [vmem:[#allocation6 + $0x458] sm:$0xff] }
 0x375   : > { %v692_v45 = vrot.slane %v691_v44, 1 }
 0x377   : > { %v693_v46 = vadd.f32 %v692_v45, %v691_v44  ;;  %v745_v44 = vld [vmem:[#allocation6 + $0x338] sm:$0xff]  ;;  %v1550_v45 = vpack.c.bf16 %v740_v41, %v738_v40  ;;  %v993_v40 = vld [vmem:[#allocation6 + $0x440] sm:$0xff]  ;;  %v995_v41 = vld [vmem:[#allocation6 + $0x450] sm:$0xff] }
 0x379   : > { %1654 = vpush %v693_v46  ;;  %v1552_v46 = vpack.c.bf16 %v745_v44, %v743_v42  ;;  %v998_v42 = vld [vmem:[#allocation6 + $0x468] sm:$0xff]  ;;  %v1000_v44 = vld [vmem:[#allocation6 + $0x478] sm:$0xff] }
 0x3aa   : > { %s1655_s6 = spop %1654 }
 0x3ab   : > { %s695_s26 = smul.f32 0.00048828125, %s1655_s6 }
 0x3ad   : > { %s696_s7 = sadd.f32 1e-05, %s695_s26 }
 0x3af   : > { %v697_v47 = vstv %s696_s7 }
 0x3b0   : > { %1727 = vrsqrt.f32 %v697_v47  ;;  %v742_v47 = vld [vmem:[#allocation6 + $0x320] sm:$0xff] }
 0x3ba   : > { %v1728_v48 = vpop.eup %1727 }
 0x3bb   : > { %1656 = vpush %v1728_v48  ;;  %v744_v48 = vld [vmem:[#allocation6 + $0x330] sm:$0xff] }
 0x3ec   : > { %s1657_s8 = spop %1656 }
 0x3ed   : > { %v700_v49 = vstv %s1657_s8 }
 0x3ee   : > { %v701_v50 = vmul.f32 %v700_v49, %v2139_v39  ;;  %v702_v51 = vmul.f32 %v700_v49, %v2141_v60  ;;  %v715_v39 = vld [vmem:[#allocation6 + $0x248] sm:$0xff]  ;;  %v717_v60 = vld [vmem:[#allocation6 + $0x258] sm:$0xff] }
 0x3ef   : > { %v1524_v2 = vpack.c.bf16 %v717_v60, %v715_v39  ;;  %v747_v49 = vld [vmem:[#allocation6 + $0x348] sm:$0xff]  ;;  %v757_v39 = vld [vmem:[#allocation6 + $0x398] sm:$0xff] }
 0x3f0   : > { %v2149_v54 = vmax.f32 %v701_v50, 0.0  ;;  %v2151_v55 = vmax.f32 %v702_v51, 0.0  ;;  %v749_v50 = vld [vmem:[#allocation6 + $0x358] sm:$0xff]  ;;  %v1554_v51 = vpack.c.bf16 %v744_v48, %v742_v47  ;;  %v999_v47 = vld [vmem:[#allocation6 + $0x470] sm:$0xff]  ;;  %v1002_v48 = vld [vmem:[#allocation6 + $0x488] sm:$0xff] }
 0x3f1   : > { %v1556_v52 = vpack.c.bf16 %v749_v50, %v747_v49  ;;  %v1004_v49 = vld [vmem:[#allocation6 + $0x498] sm:$0xff] }
 0x3f2   : > { %v770_v58 = vrot.slane %v2149_v54, 7  ;;  %v771_v59 = vrot.slane %v2151_v55, 7  ;;  %v981_v33 = vrot.slane %v2151_v55, 1 }
 0x3f4   : > { %1249 = vmatprep.mubr.msk.f32.mxu1 %vm311_vm0, %v771_v59  ;;  %v1558_v59 = vpack.c.bf16 %v748_v56, %v746_v53  ;;  %v1003_v53 = vld [vmem:[#allocation6 + $0x490] sm:$0xff]  ;;  %v1006_v56 = vld [vmem:[#allocation6 + $0x4a8] sm:$0xff] }
 0x3f5   : > { %1250 = vmatmul.mubr.msk.f32.vlgmr.msra.gmra.mrb[0].mxu1 %vm311_vm0, %v770_v58  ;;  %v753_v58 = vld [vmem:[#allocation6 + $0x378] sm:$0xff] }
 0x3f6   : > { %1519 = vmatpush1.bf16.msra.mxu1 %v1518_v61  ;;  %973 = vmatprep.mubr.f32.mxu1 %v2151_v55  ;;  %v1560_v61 = vpack.c.bf16 %v753_v58, %v751_v57  ;;  %v997_v55 = vld [vmem:[#allocation6 + $0x460] sm:$0xff]  ;;  %v1008_v57 = vld [vmem:[#allocation6 + $0x4b8] sm:$0xff] }
 0x3f7   : > { %1521 = vmatprep.subr.bf16.mxu1 %v1520_v62  ;;  %v750_v62 = vld [vmem:[#allocation6 + $0x360] sm:$0xff]  ;;  %v1594_v50 = vpack.c.bf16 %v999_v47, %v997_v55  ;;  %v1042_v55 = vld [vmem:[#allocation6 + $0x5c8] sm:$0xff]  ;;  %v1044_v47 = vld [vmem:[#allocation6 + $0x5d8] sm:$0xff] }
 0x3f8   : > { %v1562_v60 = vpack.c.bf16 %v752_v63, %v750_v62  ;;  %v1007_v62 = vld [vmem:[#allocation6 + $0x4b0] sm:$0xff]  ;;  %v1010_v63 = vld [vmem:[#allocation6 + $0x4c8] sm:$0xff] }
 0x3fa   : > { %1523 = vmatpush1.bf16.msra.mxu1 %v1522_v1  ;;  %v1564_v1 = vpack.c.bf16 %v757_v39, %v755_v0  ;;  %v1012_v0 = vld [vmem:[#allocation6 + $0x4d8] sm:$0xff] }
 0x3fb   : > { %1525 = vmatprep.subr.bf16.mxu1 %v1524_v2  ;;  %v754_v2 = vld [vmem:[#allocation6 + $0x380] sm:$0xff] }
 0x3fc   : > { %v1566_v6 = vpack.c.bf16 %v756_v3, %v754_v2  ;;  %v1011_v2 = vld [vmem:[#allocation6 + $0x4d0] sm:$0xff]  ;;  %v1014_v3 = vld [vmem:[#allocation6 + $0x4e8] sm:$0xff] }
 0x3fe   : > { %1527 = vmatpush1.bf16.msra.mxu1 %v1526_v7  ;;  %v1568_v7 = vpack.c.bf16 %v761_v5, %v759_v4  ;;  %v1016_v4 = vld [vmem:[#allocation6 + $0x4f8] sm:$0xff] }
 0x3ff   : > { %1529 = vmatprep.subr.bf16.mxu1 %v1528_v8  ;;  %v758_v8 = vld [vmem:[#allocation6 + $0x3a0] sm:$0xff] }
 0x400   : > { %v1570_v12 = vpack.c.bf16 %v760_v9, %v758_v8  ;;  %v1015_v8 = vld [vmem:[#allocation6 + $0x4f0] sm:$0xff]  ;;  %v1018_v9 = vld [vmem:[#allocation6 + $0x508] sm:$0xff] }
 0x402   : > { %1531 = vmatpush1.bf16.msra.mxu1 %v1530_v13  ;;  %v1572_v13 = vpack.c.bf16 %v765_v11, %v763_v10  ;;  %v1020_v10 = vld [vmem:[#allocation6 + $0x518] sm:$0xff] }
 0x403   : > { %1533 = vmatprep.subr.bf16.mxu1 %v1532_v14  ;;  %v762_v14 = vld [vmem:[#allocation6 + $0x3c0] sm:$0xff] }
 0x404   : > { %v1574_v18 = vpack.c.bf16 %v764_v15, %v762_v14  ;;  %v1019_v14 = vld [vmem:[#allocation6 + $0x510] sm:$0xff]  ;;  %v1022_v15 = vld [vmem:[#allocation6 + $0x528] sm:$0xff] }
 0x406   : > { %1535 = vmatpush1.bf16.msra.mxu1 %v1534_v19  ;;  %v1576_v19 = vpack.c.bf16 %v769_v17, %v767_v16  ;;  %v1024_v16 = vld [vmem:[#allocation6 + $0x538] sm:$0xff] }
 0x407   : > { %1537 = vmatprep.subr.bf16.mxu1 %v1536_v20  ;;  %v766_v20 = vld [vmem:[#allocation6 + $0x3e0] sm:$0xff] }
 0x408   : > { %v1578_v24 = vpack.c.bf16 %v768_v21, %v766_v20  ;;  %v1023_v20 = vld [vmem:[#allocation6 + $0x530] sm:$0xff]  ;;  %v1026_v21 = vld [vmem:[#allocation6 + $0x548] sm:$0xff] }
 0x40a   : > { %1539 = vmatpush1.bf16.msra.mxu1 %v1538_v25  ;;  %v1580_v25 = vpack.c.bf16 %v988_v23, %v986_v22  ;;  %v1028_v22 = vld [vmem:[#allocation6 + $0x558] sm:$0xff] }
 0x40b   : > { %1541 = vmatprep.subr.bf16.mxu1 %v1540_v26  ;;  %v985_v26 = vld [vmem:[#allocation6 + $0x400] sm:$0xff] }
 0x40c   : > { %v1582_v29 = vpack.c.bf16 %v987_v43, %v985_v26  ;;  %v1027_v26 = vld [vmem:[#allocation6 + $0x550] sm:$0xff]  ;;  %v1030_v43 = vld [vmem:[#allocation6 + $0x568] sm:$0xff] }
 0x40e   : > { %1543 = vmatpush1.bf16.msra.mxu1 %v1542_v30  ;;  %v1584_v30 = vpack.c.bf16 %v992_v28, %v990_v27  ;;  %v1032_v27 = vld [vmem:[#allocation6 + $0x578] sm:$0xff] }
 0x40f   : > { %1545 = vmatprep.subr.bf16.mxu1 %v1544_v31  ;;  %v989_v31 = vld [vmem:[#allocation6 + $0x420] sm:$0xff] }
 0x412   : > { %1547 = vmatpush1.bf16.msra.mxu1 %v1546_v37  ;;  %v1586_v37 = vpack.c.bf16 %v991_v32, %v989_v31  ;;  %v1031_v31 = vld [vmem:[#allocation6 + $0x570] sm:$0xff]  ;;  %v1034_v32 = vld [vmem:[#allocation6 + $0x588] sm:$0xff] }
 0x413   : > { %1549 = vmatprep.subr.bf16.mxu1 %v1548_v38  ;;  %v1588_v38 = vpack.c.bf16 %v996_v35, %v994_v34 }
 0x416   : > { %1551 = vmatpush1.bf16.msra.mxu1 %v1550_v45  ;;  %v1590_v45 = vpack.c.bf16 %v995_v41, %v993_v40  ;;  %v1038_v40 = vld [vmem:[#allocation6 + $0x5a8] sm:$0xff]  ;;  %v1040_v41 = vld [vmem:[#allocation6 + $0x5b8] sm:$0xff] }
 0x417   : > { %1553 = vmatprep.subr.bf16.mxu1 %v1552_v46  ;;  %v1592_v46 = vpack.c.bf16 %v1000_v44, %v998_v42  ;;  %v1632_v44 = vpack.c.bf16 %v1040_v41, %v1038_v40 }
 0x41a   : > { %1555 = vmatpush1.bf16.msra.mxu1 %v1554_v51  ;;  %v1596_v51 = vpack.c.bf16 %v1004_v49, %v1002_v48  ;;  %v1636_v49 = vpack.c.bf16 %v1044_v47, %v1042_v55 }
 0x41b   : > { %1557 = vmatprep.subr.bf16.mxu1 %v1556_v52  ;;  %v1001_v52 = vld [vmem:[#allocation6 + $0x480] sm:$0xff] }
 0x41c   : > { %v1598_v58 = vpack.c.bf16 %v1003_v53, %v1001_v52  ;;  %v1046_v52 = vld [vmem:[#allocation6 + $0x5e8] sm:$0xff]  ;;  %v1048_v53 = vld [vmem:[#allocation6 + $0x5f8] sm:$0xff] }
 0x41e   : > { %1559 = vmatpush1.bf16.msra.mxu1 %v1558_v59  ;;  %v1600_v59 = vpack.c.bf16 %v1008_v57, %v1006_v56  ;;  %v1640_v57 = vpack.c.bf16 %v1048_v53, %v1046_v52 }
 0x41f   : > { %1561 = vmatprep.subr.bf16.mxu1 %v1560_v61  ;;  %v1005_v61 = vld [vmem:[#allocation6 + $0x4a0] sm:$0xff] }
 0x420   : > { %v1602_v39 = vpack.c.bf16 %v1007_v62, %v1005_v61  ;;  %v980_v62 = vrot.slane %v2149_v54, 1 }
 0x422   : > { %1563 = vmatpush1.bf16.msra.mxu1 %v1562_v60  ;;  %v1604_v60 = vpack.c.bf16 %v1012_v0, %v1010_v63  ;;  %v1123_v63 = vstv %s1122_s27 }
 0x423   : > { %1565 = vmatprep.subr.bf16.mxu1 %v1564_v1  ;;  %v1009_v1 = vld [vmem:[#allocation6 + $0x4c0] sm:$0xff] }
 0x424   : > { %v1606_v5 = vpack.c.bf16 %v1011_v2, %v1009_v1 }
 0x426   : > { %1567 = vmatpush1.bf16.msra.mxu1 %v1566_v6  ;;  %v1608_v6 = vpack.c.bf16 %v1016_v4, %v1014_v3 }
 0x427   : > { %1569 = vmatprep.subr.bf16.mxu1 %v1568_v7  ;;  %v1013_v7 = vld [vmem:[#allocation6 + $0x4e0] sm:$0xff] }
 0x428   : > { %v1610_v11 = vpack.c.bf16 %v1015_v8, %v1013_v7 }
 0x42a   : > { %1571 = vmatpush1.bf16.msra.mxu1 %v1570_v12  ;;  %v1612_v12 = vpack.c.bf16 %v1020_v10, %v1018_v9 }
 0x42b   : > { %1573 = vmatprep.subr.bf16.mxu1 %v1572_v13  ;;  %v1017_v13 = vld [vmem:[#allocation6 + $0x500] sm:$0xff] }
 0x42c   : > { %v1614_v17 = vpack.c.bf16 %v1019_v14, %v1017_v13 }
 0x42e   : > { %1575 = vmatpush1.bf16.msra.mxu1 %v1574_v18  ;;  %v1616_v18 = vpack.c.bf16 %v1024_v16, %v1022_v15 }
 0x42f   : > { %1577 = vmatprep.subr.bf16.mxu1 %v1576_v19  ;;  %v1021_v19 = vld [vmem:[#allocation6 + $0x520] sm:$0xff] }
 0x430   : > { %v1618_v23 = vpack.c.bf16 %v1023_v20, %v1021_v19 }
 0x432   : > { %1579 = vmatpush1.bf16.msra.mxu1 %v1578_v24  ;;  %v1620_v24 = vpack.c.bf16 %v1028_v22, %v1026_v21 }
 0x433   : > { %1581 = vmatprep.subr.bf16.mxu1 %v1580_v25  ;;  %v1025_v25 = vld [vmem:[#allocation6 + $0x540] sm:$0xff] }
 0x434   : > { %v1622_v28 = vpack.c.bf16 %v1027_v26, %v1025_v25 }
 0x435   : > { %974 = vmatmul.mubr.f32.vlgmr.msra.gmra.mrb[0].mxu1 %v2149_v54 }
 0x436   : > { %1583 = vmatpush1.bf16.msra.mxu1 %v1582_v29  ;;  %1251 = vmatprep.mubr.msk.f32.mxu1 %vm524_vm1, %v981_v33  ;;  %v1624_v29 = vpack.c.bf16 %v1032_v27, %v1030_v43  ;;  %v1036_v33 = vld [vmem:[#allocation6 + $0x598] sm:$0xff] }
 0x437   : > { %1585 = vmatprep.subr.bf16.mxu1 %v1584_v30  ;;  %v1029_v30 = vld [vmem:[#allocation6 + $0x560] sm:$0xff]  ;;  %v1628_v35 = vpack.c.bf16 %v1036_v33, %v1034_v32 }
 0x438   : > { %v1626_v34 = vpack.c.bf16 %v1031_v31, %v1029_v30 }
 0x43a   : > { %1587 = vmatpush1.bf16.msra.mxu1 %v1586_v37  ;;  %v1033_v37 = vld [vmem:[#allocation6 + $0x580] sm:$0xff] }
 0x43b   : > { %1589 = vmatprep.subr.bf16.mxu1 %v1588_v38  ;;  %v1035_v38 = vld [vmem:[#allocation6 + $0x590] sm:$0xff] }
 0x43c   : > { %v1630_v42 = vpack.c.bf16 %v1035_v38, %v1033_v37 }
 0x43e   : > { %1591 = vmatpush1.bf16.msra.mxu1 %v1590_v45  ;;  %v1037_v45 = vld [vmem:[#allocation6 + $0x5a0] sm:$0xff] }
 0x43f   : > { %1593 = vmatprep.subr.bf16.mxu1 %v1592_v46  ;;  %v1039_v46 = vld [vmem:[#allocation6 + $0x5b0] sm:$0xff] }
 0x440   : > { %v1634_v48 = vpack.c.bf16 %v1039_v46, %v1037_v45 }
 0x442   : > { %1595 = vmatpush1.bf16.msra.mxu1 %v1594_v50  ;;  %v1041_v50 = vld [vmem:[#allocation6 + $0x5c0] sm:$0xff] }
 0x443   : > { %1597 = vmatprep.subr.bf16.mxu1 %v1596_v51  ;;  %v1043_v51 = vld [vmem:[#allocation6 + $0x5d0] sm:$0xff] }
 0x444   : > { %v1638_v56 = vpack.c.bf16 %v1043_v51, %v1041_v50 }
 0x446   : > { %1599 = vmatpush1.bf16.msra.mxu1 %v1598_v58  ;;  %v1045_v58 = vld [vmem:[#allocation6 + $0x5e0] sm:$0xff] }
 0x447   : > { %1601 = vmatprep.subr.bf16.mxu1 %v1600_v59  ;;  %v1047_v59 = vld [vmem:[#allocation6 + $0x5f0] sm:$0xff] }
 0x448   : > { %v1642_v61 = vpack.c.bf16 %v1047_v59, %v1045_v58 }
 0x44a   : > { %1603 = vmatpush1.bf16.msra.mxu1 %v1602_v39 }
 0x44b   : > { %1605 = vmatprep.subr.bf16.mxu1 %v1604_v60 }
 0x44e   : > { %1607 = vmatpush1.bf16.msra.mxu1 %v1606_v5 }
 0x44f   : > { %1609 = vmatprep.subr.bf16.mxu1 %v1608_v6 }
 0x452   : > { %1611 = vmatpush1.bf16.msra.mxu1 %v1610_v11 }
 0x453   : > { %1613 = vmatprep.subr.bf16.mxu1 %v1612_v12 }
 0x456   : > { %1615 = vmatpush1.bf16.msra.mxu1 %v1614_v17 }
 0x457   : > { %1617 = vmatprep.subr.bf16.mxu1 %v1616_v18 }
 0x45a   : > { %1619 = vmatpush1.bf16.msra.mxu1 %v1618_v23 }
 0x45b   : > { %1621 = vmatprep.subr.bf16.mxu1 %v1620_v24 }
 0x45e   : > { %1623 = vmatpush1.bf16.msra.mxu1 %v1622_v28 }
 0x45f   : > { %1625 = vmatprep.subr.bf16.mxu1 %v1624_v29 }
 0x462   : > { %1627 = vmatpush1.bf16.msra.mxu1 %v1626_v34 }
 0x463   : > { %1629 = vmatprep.subr.bf16.mxu1 %v1628_v35 }
 0x466   : > { %1631 = vmatpush1.bf16.msra.mxu1 %v1630_v42 }
 0x467   : > { %1633 = vmatprep.subr.bf16.mxu1 %v1632_v44 }
 0x46a   : > { %1635 = vmatpush1.bf16.msra.mxu1 %v1634_v48 }
 0x46b   : > { %1637 = vmatprep.subr.bf16.mxu1 %v1636_v49 }
 0x46e   : > { %1639 = vmatpush1.bf16.msra.mxu1 %v1638_v56 }
 0x46f   : > { %1641 = vmatprep.subr.bf16.mxu1 %v1640_v57 }
 0x472   : > { %1643 = vmatpush1.bf16.msra.mxu1 %v1642_v61 }
 0x475   : > { %1252 = vmatmul.mubr.msk.f32.vlgmr.msra.gmra.mrb[0].mxu1 %vm524_vm1, %v980_v62 }
 0x548   : > { %v1115_v0 = vpop.f32.mrb[0].mxu1 }
 0x549   : > { %v1124_v39 = vadd.f32 %v1123_v63, %v1115_v0  ;;  %v1117_v60 = vpop.f32.mrb[1].mxu1 }
 0x54a   : > { %v1125_v1 = vadd.f32 %v1123_v63, %v1117_v60 }
 0x54b   : > { %1126 = vst [vmem:[%s241_s16] sm:$0xff] %v1124_v39 }
 0x54c   : > { %1127 = vst [vmem:[%s241_s16 + $0x8] sm:$0xff] %v1125_v1 }
 0x54d   : > { %1828 = shalt.err (!%p1825_p6)
}
 0x54e   : > { %s1829_s25 = scalar_lea.hbm %s2172_s13, 256  ;;  %s1833_s6 = scalar_lea.hbm %s2221_s4, 512 }
 0x54f   : > { %p1830_p10 = scmp.ne.s32.totalorder %s2172_s13, %s1829_s25  ;;  %p1834_p3 = scmp.lt.u32.totalorder %s2172_s13, %s2221_s4 }
 0x550   : > { %p1835_p4 = scmp.lt.u32.totalorder %s1833_s6, %s1829_s25  ;;  %p1837_p5 = scmp.lt.u32.totalorder %s1829_s25, %s2172_s13 }
 0x551   : > { %p1831_p0 = pnand %p1830_p10, %p2237_p11 }
 0x552   : > { %p1836_p8 = por %p1835_p4, %p1834_p3 }
 0x553   : > { %p1832_p1 = pneg %p1831_p0 }
 0x554   : > { %p1838_p7 = por %p1837_p5, %p1836_p8 }
 0x556   : > { %p1839_p9 = pnand %p1838_p7, %p1832_p1 }
 0x558   : > { %1842 = shalt.err (!%p1839_p9)
}
 0x559   : > { %1668 = dma.vmem_to_hbm [thread:$0]  (%p2237_p11), %s2174_s15, 256, %s2172_s13, %s1129_s0  }
 0x55a PF: > { %s1155_s8 = sand.u32 1, %s1877_s17   ;;  %p2238_p12 = scmp.ne.s32.totalorder %s2226_s23, 0 }
 0x55b   : > { %p2239_p2 = scmp.ge.s32.totalorder %s1889_s20, 2  ;;  %s1156_s27 = scalar_lea.sflag [#allocation5], %s1155_s8 }
 0x55d   : > { %p1682_p13 = pnand %p2239_p2, %p2238_p12 }
 0x55f   : > { %1872 = dma.done.wait (!%p1682_p13), %s1156_s27, 256  }
 0x560   : > { %1874 = vsyncadd (!%p1682_p13), %s1156_s27, 4294967040  ;;  %p17_p6 = scmp.ge.s32.totalorder %s2035_s9, 4   ;;  %s2240_s17 = smov %s1881_s18 }
 0x561   : > { %s2241_s18 = smov %s1885_s19  ;;  %s2242_s19 = smov %s2051_s14 }
 0x562   : > { %s2243_s20 = smov %s2035_s9  ;;  %19 = sbr.rel (!%p17_p6) target bundleno = 7 (0x7), region = 92 }
 0x569   :  { %1161 = vsyncpa [#allocation4], 1 }
 0x56a   :  { %1163 = vsyncpa [#allocation4 + $0x1], 1 }
 0x56b   :  { %1164 = vsyncpa [#allocation7], 1 }
 0x56c   :  { %1165 = vsyncpa [#allocation5], 1 }
 0x56d   :  { %1167 = vsyncpa [#allocation5 + $0x1], 1 }

</bundles_post_ra>
